<compile_context>
chip_gen: v6e
topology: v6e:2x2x1
jax: 0.10.0
libtpu: 0.0.40
codegen_flags: <defaults>
</compile_context>

<pallas_src>
import functools

import jax
import jax.numpy as jnp
from jax import lax
from jax.experimental import pallas as pl
from jax.experimental.pallas import tpu as pltpu

_VMEM_LIMIT_BYTES = 64 * 1024 * 1024   # explicit scoped-VMEM cap, valid on all gens


def _round_up(x, m):
    return (x + m - 1) // m * m


def _pick_col_block(total_cols, requested):
    """Largest multiple-of-128 divisor of total_cols that is <= requested."""
    cb = max(128, min(requested, total_cols))
    while total_cols % cb:
        cb -= 128
    return cb


# --------------------------------------------------------------------------
# Kernel 1: time-parallel input projection (BN affine + x @ W_ih^T + bias).
# Tiled over (rows, gate columns); both axes are embarrassingly parallel.
# --------------------------------------------------------------------------
def _input_proj_kernel(x_ref, scale_ref, shift_ref, w_ref, b_ref, o_ref):
    # BN affine in f32, then cast activations to the weight dtype (bf16 default)
    # so the MXU runs a bf16 x bf16 -> f32 matmul.
    x_bn = (x_ref[...] * scale_ref[...] + shift_ref[...]).astype(w_ref.dtype)
    acc = jnp.dot(x_bn, w_ref[...], preferred_element_type=jnp.float32)
    o_ref[...] = (acc + b_ref[...]).astype(o_ref.dtype)


def _input_projection(x2d, scale, shift, w_ih_t, bias, *, row_block, col_block,
                      out_dtype):
    rows, I = x2d.shape
    G = w_ih_t.shape[1]
    row_block = min(row_block, rows)
    grid = (pl.cdiv(rows, row_block), G // col_block)
    return pl.pallas_call(
        _input_proj_kernel,
        out_shape=jax.ShapeDtypeStruct((rows, G), out_dtype),
        grid_spec=pltpu.PrefetchScalarGridSpec(
            num_scalar_prefetch=0,
            grid=grid,
            in_specs=[
                pl.BlockSpec((row_block, I), lambda m, n: (m, 0)),   # x rows
                pl.BlockSpec((1, I), lambda m, n: (0, 0)),           # bn scale
                pl.BlockSpec((1, I), lambda m, n: (0, 0)),           # bn shift
                pl.BlockSpec((I, col_block), lambda m, n: (0, n)),   # W_ih^T cols
                pl.BlockSpec((1, col_block), lambda m, n: (0, n)),   # bias cols
            ],
            out_specs=pl.BlockSpec((row_block, col_block), lambda m, n: (m, n)),
        ),
        compiler_params=pltpu.CompilerParams(
            dimension_semantics=("parallel", "parallel"),
            vmem_limit_bytes=_VMEM_LIMIT_BYTES),
    )(x2d, scale, shift, w_ih_t, bias)


# --------------------------------------------------------------------------
# Kernel 2: sequential LSTM recurrence.
# Grid = (batch tiles [parallel, megacore], time blocks [arbitrary, sequential]).
# Gate order after host-side repack: [i | f | o | g].
# --------------------------------------------------------------------------
def _lstm_recurrence_kernel(len_ref, gx_ref, whh_ref, o_ref, h_sc, c_sc, *, unroll):
    tb = pl.program_id(1)
    TT = gx_ref.shape[0]
    NB = h_sc.shape[0]
    Hp = h_sc.shape[1]

    @pl.when(tb == 0)
    def _():
        h_sc[...] = jnp.zeros_like(h_sc)
        c_sc[...] = jnp.zeros_like(c_sc)

    lengths = len_ref[...]              # (NB, 1) int32
    w_hh = whh_ref[...]                 # (Hp, 4Hp) bf16/f32, VMEM-resident constant
    t_base = tb * TT                    # hoisted out of the unrolled loop

    def step(tt, carry):
        h, c = carry
        gates = (gx_ref[tt].astype(jnp.float32)
                 + jnp.dot(h.astype(w_hh.dtype), w_hh,
                           preferred_element_type=jnp.float32))       # (NB, 4Hp) f32
        # one fused sigmoid over the contiguous [i | f | o] slab, tanh over [g]
        ifo = jax.nn.sigmoid(gates[:, :3 * Hp])
        g_g = jnp.tanh(gates[:, 3 * Hp:])
        i_g = ifo[:, 0 * Hp:1 * Hp]
        f_g = ifo[:, 1 * Hp:2 * Hp]
        o_g = ifo[:, 2 * Hp:3 * Hp]

        c_new = f_g * c + i_g * g_g       # c stays f32: no compounding bf16 error
        h_new = o_g * jnp.tanh(c_new)

        # pack/pad_packed semantics: freeze state and zero output past each length.
        # Broadcast the mask ONCE and reuse it for all three selects.
        mask = jnp.broadcast_to((t_base + tt) < lengths, (NB, Hp))
        h = jnp.where(mask, h_new, h)
        c = jnp.where(mask, c_new, c)
        o_ref[tt] = jnp.where(mask, h_new, 0.0).astype(o_ref.dtype)
        return (h, c)

    # Partial unroll: keeps LLO scheduler visibility without blowing vreg budget
    # when TT is large.
    h, c = lax.fori_loop(0, TT, step, (h_sc[...], c_sc[...]), unroll=unroll)
    h_sc[...] = h
    c_sc[...] = c


# --------------------------------------------------------------------------
# Host-side weight preparation: fold BN, reorder gates (i,f,g,o)->(i,f,o,g),
# pad hidden size to a multiple of 128 lanes.
# --------------------------------------------------------------------------
def _pack_gates(params, H, Hp):
    perm = jnp.array([0, 1, 3, 2], dtype=jnp.int32)   # i, f, g, o -> i, f, o, g

    def repack(w):                                    # (..., 4H) -> (..., 4*Hp)
        lead = w.shape[:-1]
        w4 = w.reshape(lead + (4, H))
        w4 = jnp.take(w4, perm, axis=-2)
        w4 = jnp.pad(w4, [(0, 0)] * (len(lead) + 1) + [(0, Hp - H)])
        return w4.reshape(lead + (4 * Hp,))

    w_ih_t = repack(params["w_ih_t"])                         # (I, 4Hp)
    bias = repack(params["bias"].reshape(1, -1))              # (1, 4Hp)
    w_hh_t = repack(params["w_hh_t"])                         # (H, 4Hp)
    w_hh_t = jnp.pad(w_hh_t, ((0, Hp - H), (0, 0)))           # (Hp, 4Hp)
    return w_ih_t, w_hh_t, bias


@functools.partial(jax.jit,
                   static_argnames=("time_block", "row_block", "col_block",
                                    "batch_block", "recurrence_unroll",
                                    "compute_dtype"))
def batch_rnn_forward(x, output_lengths, params, *, time_block=16, row_block=512,
                      col_block=2048, batch_block=None, recurrence_unroll=4,
                      compute_dtype=jnp.bfloat16):
    """x: (T, N, input_size) f32; output_lengths: (N,) int32 -> (T, N, H) f32.

    compute_dtype controls the MXU operand dtype (W_ih, W_hh, gates_x intermediate);
    accumulation and the (h, c) state stay f32.  batch_block < Np adds parallel
    batch tiles (e.g. Np//2 on v7x to use both TensorCores).  Throughput of the
    recurrence scales nearly linearly with batch up to the MXU height (128/256),
    since streaming W_hh dominates the per-timestep cost.
    """
    T, N, I = x.shape
    H = params["w_hh_t"].shape[0]

    sub = 8 if jnp.dtype(compute_dtype).itemsize >= 4 else 16   # sublane alignment
    Hp = _round_up(H, 128)               # lane-aligned hidden size
    Np = _round_up(N, sub)               # sublane-aligned batch
    if batch_block is None:
        NB = Np
    else:
        NB = _round_up(max(sub, min(batch_block, Np)), sub)
        Np = _round_up(Np, NB)
    TT = max(1, min(time_block, T))      # timesteps per grid step
    Tp = _round_up(T, TT)

    w_ih_t, w_hh_t, bias = _pack_gates(params, H, Hp)
    w_ih_t = w_ih_t.astype(compute_dtype)        # bf16 weights, f32 accumulation
    w_hh_t = w_hh_t.astype(compute_dtype)
    scale = params["bn_scale"].reshape(1, I)
    shift = params["bn_shift"].reshape(1, I)

    x_p = jnp.pad(x, ((0, Tp - T), (0, Np - N), (0, 0)))
    lens_p = jnp.pad(output_lengths.astype(jnp.int32), (0, Np - N)).reshape(Np, 1)

    # ---- time-parallel input projection: (Tp*Np, I) @ (I, 4Hp), bf16 output ----
    cb = _pick_col_block(4 * Hp, col_block)
    gx2d = _input_projection(x_p.reshape(Tp * Np, I), scale, shift, w_ih_t, bias,
                             row_block=row_block, col_block=cb,
                             out_dtype=compute_dtype)
    gx = gx2d.reshape(Tp, Np, 4 * Hp)

    # ---- sequential recurrence, parallel over batch tiles, blocked over time ----
    kernel = functools.partial(_lstm_recurrence_kernel, unroll=recurrence_unroll)
    out = pl.pallas_call(
        kernel,
        out_shape=jax.ShapeDtypeStruct((Tp, Np, Hp), jnp.float32),
        grid_spec=pltpu.PrefetchScalarGridSpec(
            num_scalar_prefetch=0,
            grid=(Np // NB, Tp // TT),
            in_specs=[
                pl.BlockSpec((NB, 1), lambda nb, tb: (nb, 0)),               # lengths
                pl.BlockSpec((TT, NB, 4 * Hp), lambda nb, tb: (tb, nb, 0)),  # gates_x
                # W_hh^T: whole-array, VMEM-resident, copied in once — never
                # re-DMA'd per grid step and not double-buffered.
                pl.BlockSpec(memory_space=pltpu.MemorySpace.VMEM),
            ],
            out_specs=pl.BlockSpec((TT, NB, Hp), lambda nb, tb: (tb, nb, 0)),
            scratch_shapes=[
                pltpu.VMEM((NB, Hp), jnp.float32),                  # h carry
                pltpu.VMEM((NB, Hp), jnp.float32),                  # c carry
            ],
        ),
        compiler_params=pltpu.CompilerParams(
            dimension_semantics=("parallel", "arbitrary"),          # batch ∥, time seq
            vmem_limit_bytes=_VMEM_LIMIT_BYTES),
    )(lens_p, gx, w_hh_t)

    return out[:T, :N, :H]


# --------------------------------------------------------------------------
# Pure-JAX reference (canonical i,f,g,o order, no padding) and test params.
# --------------------------------------------------------------------------
def batch_rnn_reference(x, output_lengths, params):
    T, N, I = x.shape
    H = params["w_hh_t"].shape[0]
    x_bn = x * params["bn_scale"].reshape(1, 1, I) + params["bn_shift"].reshape(1, 1, I)

    def step(carry, xt):
        h, c = carry
        gates = xt @ params["w_ih_t"] + h @ params["w_hh_t"] + params["bias"]
        i_g = jax.nn.sigmoid(gates[:, 0 * H:1 * H])
        f_g = jax.nn.sigmoid(gates[:, 1 * H:2 * H])
        g_g = jnp.tanh(gates[:, 2 * H:3 * H])
        o_g = jax.nn.sigmoid(gates[:, 3 * H:4 * H])
        c = f_g * c + i_g * g_g
        h = o_g * jnp.tanh(c)
        return (h, c), h

    init = (jnp.zeros((N, H), jnp.float32), jnp.zeros((N, H), jnp.float32))
    _, hs = lax.scan(step, init, x_bn)
    mask = (jnp.arange(T)[:, None] < output_lengths[None, :]).astype(jnp.float32)
    return hs * mask[:, :, None]


def make_params(key, input_size, hidden_size):
    """Deterministic synthetic parameters matching the PyTorch module shapes."""
    ks = jax.random.split(key, 8)
    H, I = hidden_size, input_size
    stdv = 1.0 / (H ** 0.5)
    u = lambda k, shape: jax.random.uniform(k, shape, jnp.float32, -stdv, stdv)

    # nn.LSTM: weight_ih_l0 (4H, I), weight_hh_l0 (4H, H), biases (4H,), order i,f,g,o
    w_ih = u(ks[0], (4 * H, I))
    w_hh = u(ks[1], (4 * H, H))
    b_ih = u(ks[2], (4 * H,))
    b_hh = u(ks[3], (4 * H,))

    # nn.BatchNorm1d(input_size), inference mode (eps=1e-5)
    gamma = 1.0 + 0.1 * jax.random.normal(ks[4], (I,), jnp.float32)
    beta = 0.1 * jax.random.normal(ks[5], (I,), jnp.float32)
    running_mean = 0.1 * jax.random.normal(ks[6], (I,), jnp.float32)
    running_var = jnp.abs(jax.random.normal(ks[7], (I,), jnp.float32)) + 0.5
    eps = 1e-5
    bn_scale = gamma / jnp.sqrt(running_var + eps)
    bn_shift = beta - running_mean * bn_scale

    return {
        "w_ih_t": jnp.asarray(w_ih.T),          # (I, 4H)
        "w_hh_t": jnp.asarray(w_hh.T),          # (H, 4H)
        "bias": b_ih + b_hh,                    # (4H,)
        "bn_scale": bn_scale,
        "bn_shift": bn_shift,
    }


# TODO(synk): bidirectional=True path (reverse-direction LSTM + direction sum) is not
# implemented; the default constructor uses bidirectional=False.


if __name__ == "__main__":
    T, N, I, H = 8, 2, 16, 32
    key = jax.random.PRNGKey(0)
    k_x, k_p = jax.random.split(key)

    x = jax.random.normal(k_x, (T, N, I), jnp.float32)          # (T, N, input_size)
    output_lengths = jnp.array([T, 5], dtype=jnp.int32)         # variable lengths
    params = make_params(k_p, I, H)

    ref = batch_rnn_reference(x, output_lengths, params)

    # Default bf16 compute path; time_block=4 -> two sequential time blocks,
    # exercising the (h, c) carry across grid steps.
    out = batch_rnn_forward(x, output_lengths, params, time_block=4)
    out = jax.block_until_ready(out)
    assert out.shape == (T, N, H)
    assert jnp.allclose(out, ref, atol=3e-2, rtol=3e-2), "bf16 mismatch vs reference"

    # Full f32 path reproduces the module semantics to tight tolerance.
    out_f32 = batch_rnn_forward(x, output_lengths, params, time_block=4,
                                compute_dtype=jnp.float32)
    out_f32 = jax.block_until_ready(out_f32)
    assert jnp.allclose(out_f32, ref, atol=1e-4, rtol=1e-4), "f32 mismatch vs reference"

    print("KERNEL_OK")
</pallas_src>

<mosaic_0001>
module attributes {stable_mosaic.version = 11 : i64} {
  func.func @_input_proj_kernel(%arg0: i32, %arg1: i32, %arg2: memref<128x16xf32, #tpu.memory_space<vmem>>, %arg3: memref<1x16xf32, #tpu.memory_space<vmem>>, %arg4: memref<1x16xf32, #tpu.memory_space<vmem>>, %arg5: memref<16x512xbf16, #tpu.memory_space<vmem>>, %arg6: memref<1x512xf32, #tpu.memory_space<vmem>>, %arg7: memref<128x512xbf16, #tpu.memory_space<vmem>>) attributes {dimension_semantics = [#tpu.dimension_semantics<parallel>, #tpu.dimension_semantics<parallel>], iteration_bounds = array<i64: 1, 1>, scalar_prefetch = 0 : i64, scratch_operands = 0 : i64, tpu.core_type = #tpu.core_type<tc>, window_params = [{transform_indices = @transform_0, window_bounds = array<i64: 128, 16>}, {pipeline_mode = #tpu.pipeline_mode<synchronous>, transform_indices = @transform_1, window_bounds = array<i64: 1, 16>}, {pipeline_mode = #tpu.pipeline_mode<synchronous>, transform_indices = @transform_2, window_bounds = array<i64: 1, 16>}, {transform_indices = @transform_3, window_bounds = array<i64: 16, 512>}, {transform_indices = @transform_4, window_bounds = array<i64: 1, 512>}, {transform_indices = @transform_5, window_bounds = array<i64: 128, 512>}]} {
    %c0 = arith.constant 0 : index
    %c0_0 = arith.constant 0 : index
    %0 = vector.load %arg2[%c0, %c0_0] : memref<128x16xf32, #tpu.memory_space<vmem>>, vector<128x16xf32>
    %c0_1 = arith.constant 0 : index
    %c0_2 = arith.constant 0 : index
    %1 = vector.load %arg3[%c0_1, %c0_2] : memref<1x16xf32, #tpu.memory_space<vmem>>, vector<1x16xf32>
    %2 = vector.broadcast %1 : vector<1x16xf32> to vector<128x16xf32>
    %3 = arith.mulf %0, %2 : vector<128x16xf32>
    %c0_3 = arith.constant 0 : index
    %c0_4 = arith.constant 0 : index
    %4 = vector.load %arg4[%c0_3, %c0_4] : memref<1x16xf32, #tpu.memory_space<vmem>>, vector<1x16xf32>
    %5 = vector.broadcast %4 : vector<1x16xf32> to vector<128x16xf32>
    %6 = arith.addf %3, %5 : vector<128x16xf32>
    %7 = arith.truncf %6 : vector<128x16xf32> to vector<128x16xbf16>
    %c0_5 = arith.constant 0 : index
    %c0_6 = arith.constant 0 : index
    %8 = vector.load %arg5[%c0_5, %c0_6] : memref<16x512xbf16, #tpu.memory_space<vmem>>, vector<16x512xbf16>
    %cst = arith.constant dense<0.000000e+00> : vector<128x512xf32>
    %9 = tpu.matmul %7, %8, %cst {dimension_numbers = #tpu.dot_dimension_numbers<[1], [0], [0], [1], [0, 0, 1, 1], [], []>} : vector<128x16xbf16>, vector<16x512xbf16>, vector<128x512xf32> -> vector<128x512xf32>
    %c0_7 = arith.constant 0 : index
    %c0_8 = arith.constant 0 : index
    %10 = vector.load %arg6[%c0_7, %c0_8] : memref<1x512xf32, #tpu.memory_space<vmem>>, vector<1x512xf32>
    %11 = vector.broadcast %10 : vector<1x512xf32> to vector<128x512xf32>
    %12 = arith.addf %9, %11 : vector<128x512xf32>
    %13 = arith.truncf %12 : vector<128x512xf32> to vector<128x512xbf16>
    %c0_9 = arith.constant 0 : index
    %c0_10 = arith.constant 0 : index
    %14 = vector.load %arg7[%c0_9, %c0_10] : memref<128x512xbf16, #tpu.memory_space<vmem>>, vector<128x512xbf16>
    tpu.vector_store %arg7[%c0_9, %c0_10], %13 {strides = array<i32>} : memref<128x512xbf16, #tpu.memory_space<vmem>>, vector<128x512xbf16>,
    return
  }
  func.func @transform_0(%arg0: i32, %arg1: i32) -> (i32, i32) {
    %c0_i32 = arith.constant 0 : i32
    %c0_i32_0 = arith.constant 0 : i32
    return %arg0, %c0_i32 : i32, i32
  }
  func.func @transform_1(%arg0: i32, %arg1: i32) -> (i32, i32) {
    %c0_i32 = arith.constant 0 : i32
    %c0_i32_0 = arith.constant 0 : i32
    %c0_i32_1 = arith.constant 0 : i32
    return %c0_i32, %c0_i32_0 : i32, i32
  }
  func.func @transform_2(%arg0: i32, %arg1: i32) -> (i32, i32) {
    %c0_i32 = arith.constant 0 : i32
    %c0_i32_0 = arith.constant 0 : i32
    %c0_i32_1 = arith.constant 0 : i32
    return %c0_i32, %c0_i32_0 : i32, i32
  }
  func.func @transform_3(%arg0: i32, %arg1: i32) -> (i32, i32) {
    %c0_i32 = arith.constant 0 : i32
    %c0_i32_0 = arith.constant 0 : i32
    return %c0_i32, %arg1 : i32, i32
  }
  func.func @transform_4(%arg0: i32, %arg1: i32) -> (i32, i32) {
    %c0_i32 = arith.constant 0 : i32
    %c0_i32_0 = arith.constant 0 : i32
    return %c0_i32, %arg1 : i32, i32
  }
  func.func @transform_5(%arg0: i32, %arg1: i32) -> (i32, i32) {
    %c0_i32 = arith.constant 0 : i32
    return %arg0, %arg1 : i32, i32
  }
}

module attributes {stable_mosaic.version = 11 : i64} {
  func.func @_lstm_recurrence_kernel(%arg0: i32, %arg1: i32, %arg2: memref<16x1xi32, #tpu.memory_space<vmem>>, %arg3: memref<4x16x512xbf16, #tpu.memory_space<vmem>>, %arg4: memref<128x512xbf16, #tpu.memory_space<vmem>>, %arg5: memref<4x16x128xf32, #tpu.memory_space<vmem>>, %arg6: memref<16x128xf32, #tpu.memory_space<vmem>>, %arg7: memref<16x128xf32, #tpu.memory_space<vmem>>) attributes {dimension_semantics = [#tpu.dimension_semantics<parallel>, #tpu.dimension_semantics<arbitrary>], iteration_bounds = array<i64: 1, 2>, scalar_prefetch = 0 : i64, scratch_operands = 2 : i64, tpu.core_type = #tpu.core_type<tc>, window_params = [{transform_indices = @transform_0, window_bounds = array<i64: 16, 1>}, {transform_indices = @transform_1, window_bounds = array<i64: 4, 16, 512>}, {pipeline_mode = #tpu.pipeline_mode<synchronous>, transform_indices = @transform_2, window_bounds = array<i64: 128, 512>}, {transform_indices = @transform_3, window_bounds = array<i64: 4, 16, 128>}]} {
    %c0_i32 = arith.constant 0 : i32
    %0 = arith.cmpi eq, %arg1, %c0_i32 : i32
    %1 = arith.extui %0 : i1 to i32
    %c0_i32_0 = arith.constant 0 : i32
    %2 = arith.cmpi ne, %1, %c0_i32_0 : i32
    scf.if %2 {
      %cst_41 = arith.constant 0.000000e+00 : f32
      %154 = vector.broadcast %cst_41 : f32 to vector<16x128xf32>
      %c0_42 = arith.constant 0 : index
      %c0_43 = arith.constant 0 : index
      %155 = vector.load %arg6[%c0_42, %c0_43] : memref<16x128xf32, #tpu.memory_space<vmem>>, vector<16x128xf32>
      tpu.vector_store %arg6[%c0_42, %c0_43], %154 {strides = array<i32>} : memref<16x128xf32, #tpu.memory_space<vmem>>, vector<16x128xf32>,
      %cst_44 = arith.constant 0.000000e+00 : f32
      %156 = vector.broadcast %cst_44 : f32 to vector<16x128xf32>
      %c0_45 = arith.constant 0 : index
      %c0_46 = arith.constant 0 : index
      %157 = vector.load %arg7[%c0_45, %c0_46] : memref<16x128xf32, #tpu.memory_space<vmem>>, vector<16x128xf32>
      tpu.vector_store %arg7[%c0_45, %c0_46], %156 {strides = array<i32>} : memref<16x128xf32, #tpu.memory_space<vmem>>, vector<16x128xf32>,
    } else {
    }
    %c0 = arith.constant 0 : index
    %c0_1 = arith.constant 0 : index
    %3 = vector.load %arg2[%c0, %c0_1] : memref<16x1xi32, #tpu.memory_space<vmem>>, vector<16x1xi32>
    %c0_2 = arith.constant 0 : index
    %c0_3 = arith.constant 0 : index
    %4 = vector.load %arg4[%c0_2, %c0_3] : memref<128x512xbf16, #tpu.memory_space<vmem>>, vector<128x512xbf16>
    %c4_i32 = arith.constant 4 : i32
    %5 = arith.muli %arg1, %c4_i32 : i32
    %c0_4 = arith.constant 0 : index
    %c0_5 = arith.constant 0 : index
    %6 = vector.load %arg6[%c0_4, %c0_5] : memref<16x128xf32, #tpu.memory_space<vmem>>, vector<16x128xf32>
    %c0_6 = arith.constant 0 : index
    %c0_7 = arith.constant 0 : index
    %7 = vector.load %arg7[%c0_6, %c0_7] : memref<16x128xf32, #tpu.memory_space<vmem>>, vector<16x128xf32>
    %c0_i32_8 = arith.constant 0 : i32
    %8 = arith.index_cast %c0_i32_8 : i32 to index
    %c0_9 = arith.constant 0 : index
    %c0_10 = arith.constant 0 : index
    %9 = vector.load %arg3[%8, %c0_9, %c0_10] : memref<4x16x512xbf16, #tpu.memory_space<vmem>>, vector<1x16x512xbf16>
    %10 = vector.shape_cast %9 : vector<1x16x512xbf16> to vector<16x512xbf16>
    %11 = arith.extf %10 : vector<16x512xbf16> to vector<16x512xf32>
    %12 = arith.truncf %6 : vector<16x128xf32> to vector<16x128xbf16>
    %cst = arith.constant dense<0.000000e+00> : vector<16x512xf32>
    %13 = tpu.matmul %12, %4, %cst {dimension_numbers = #tpu.dot_dimension_numbers<[1], [0], [0], [1], [0, 0, 1, 1], [], []>} : vector<16x128xbf16>, vector<128x512xbf16>, vector<16x512xf32> -> vector<16x512xf32>
    %14 = arith.addf %11, %13 : vector<16x512xf32>
    %15 = vector.extract_strided_slice %14 {offsets = [0, 0], sizes = [16, 384], strides = [1, 1]} : vector<16x512xf32> to vector<16x384xf32>
    %16 = arith.negf %15 : vector<16x384xf32>
    %17 = math.exp %16 : vector<16x384xf32>
    %cst_11 = arith.constant 1.000000e+00 : f32
    %18 = vector.broadcast %cst_11 : f32 to vector<16x384xf32>
    %19 = arith.addf %18, %17 : vector<16x384xf32>
    %20 = arith.divf %18, %19 : vector<16x384xf32>
    %21 = vector.extract_strided_slice %14 {offsets = [0, 384], sizes = [16, 128], strides = [1, 1]} : vector<16x512xf32> to vector<16x128xf32>
    %22 = math.tanh %21 : vector<16x128xf32>
    %23 = vector.extract_strided_slice %20 {offsets = [0, 0], sizes = [16, 128], strides = [1, 1]} : vector<16x384xf32> to vector<16x128xf32>
    %24 = vector.extract_strided_slice %20 {offsets = [0, 128], sizes = [16, 128], strides = [1, 1]} : vector<16x384xf32> to vector<16x128xf32>
    %25 = vector.extract_strided_slice %20 {offsets = [0, 256], sizes = [16, 128], strides = [1, 1]} : vector<16x384xf32> to vector<16x128xf32>
    %26 = arith.mulf %24, %7 : vector<16x128xf32>
    %27 = arith.mulf %23, %22 : vector<16x128xf32>
    %28 = arith.addf %26, %27 : vector<16x128xf32>
    %29 = math.tanh %28 : vector<16x128xf32>
    %30 = arith.mulf %25, %29 : vector<16x128xf32>
    %31 = arith.addi %5, %c0_i32_8 : i32
    %32 = vector.broadcast %31 : i32 to vector<16x1xi32>
    %33 = arith.cmpi slt, %32, %3 : vector<16x1xi32>
    %34 = vector.shape_cast %33 : vector<16x1xi1> to vector<16x1xi1>
    %35 = vector.broadcast %34 : vector<16x1xi1> to vector<16x128xi1>
    %36 = arith.select %35, %30, %6 : vector<16x128xi1>, vector<16x128xf32>
    %37 = arith.select %35, %28, %7 : vector<16x128xi1>, vector<16x128xf32>
    %cst_12 = arith.constant 0.000000e+00 : f32
    %38 = vector.broadcast %cst_12 : f32 to vector<16x128xf32>
    %39 = arith.select %35, %30, %38 : vector<16x128xi1>, vector<16x128xf32>
    %40 = arith.index_cast %c0_i32_8 : i32 to index
    %c0_13 = arith.constant 0 : index
    %c0_14 = arith.constant 0 : index
    %41 = vector.load %arg5[%40, %c0_13, %c0_14] : memref<4x16x128xf32, #tpu.memory_space<vmem>>, vector<1x16x128xf32>
    %42 = vector.shape_cast %41 : vector<1x16x128xf32> to vector<16x128xf32>
    %43 = vector.shape_cast %39 : vector<16x128xf32> to vector<1x16x128xf32>
    tpu.vector_store %arg5[%40, %c0_13, %c0_14], %43 {strides = array<i32>} : memref<4x16x128xf32, #tpu.memory_space<vmem>>, vector<1x16x128xf32>,
    %c1_i32 = arith.constant 1 : i32
    %44 = arith.index_cast %c1_i32 : i32 to index
    %c0_15 = arith.constant 0 : index
    %c0_16 = arith.constant 0 : index
    %45 = vector.load %arg3[%44, %c0_15, %c0_16] : memref<4x16x512xbf16, #tpu.memory_space<vmem>>, vector<1x16x512xbf16>
    %46 = vector.shape_cast %45 : vector<1x16x512xbf16> to vector<16x512xbf16>
    %47 = arith.extf %46 : vector<16x512xbf16> to vector<16x512xf32>
    %48 = arith.truncf %36 : vector<16x128xf32> to vector<16x128xbf16>
    %cst_17 = arith.constant dense<0.000000e+00> : vector<16x512xf32>
    %49 = tpu.matmul %48, %4, %cst_17 {dimension_numbers = #tpu.dot_dimension_numbers<[1], [0], [0], [1], [0, 0, 1, 1], [], []>} : vector<16x128xbf16>, vector<128x512xbf16>, vector<16x512xf32> -> vector<16x512xf32>
    %50 = arith.addf %47, %49 : vector<16x512xf32>
    %51 = vector.extract_strided_slice %50 {offsets = [0, 0], sizes = [16, 384], strides = [1, 1]} : vector<16x512xf32> to vector<16x384xf32>
    %52 = arith.negf %51 : vector<16x384xf32>
    %53 = math.exp %52 : vector<16x384xf32>
    %cst_18 = arith.constant 1.000000e+00 : f32
    %54 = vector.broadcast %cst_18 : f32 to vector<16x384xf32>
    %55 = arith.addf %54, %53 : vector<16x384xf32>
    %56 = arith.divf %54, %55 : vector<16x384xf32>
    %57 = vector.extract_strided_slice %50 {offsets = [0, 384], sizes = [16, 128], strides = [1, 1]} : vector<16x512xf32> to vector<16x128xf32>
    %58 = math.tanh %57 : vector<16x128xf32>
    %59 = vector.extract_strided_slice %56 {offsets = [0, 0], sizes = [16, 128], strides = [1, 1]} : vector<16x384xf32> to vector<16x128xf32>
    %60 = vector.extract_strided_slice %56 {offsets = [0, 128], sizes = [16, 128], strides = [1, 1]} : vector<16x384xf32> to vector<16x128xf32>
    %61 = vector.extract_strided_slice %56 {offsets = [0, 256], sizes = [16, 128], strides = [1, 1]} : vector<16x384xf32> to vector<16x128xf32>
    %62 = arith.mulf %60, %37 : vector<16x128xf32>
    %63 = arith.mulf %59, %58 : vector<16x128xf32>
    %64 = arith.addf %62, %63 : vector<16x128xf32>
    %65 = math.tanh %64 : vector<16x128xf32>
    %66 = arith.mulf %61, %65 : vector<16x128xf32>
    %67 = arith.addi %5, %c1_i32 : i32
    %68 = vector.broadcast %67 : i32 to vector<16x1xi32>
    %69 = arith.cmpi slt, %68, %3 : vector<16x1xi32>
    %70 = vector.shape_cast %69 : vector<16x1xi1> to vector<16x1xi1>
    %71 = vector.broadcast %70 : vector<16x1xi1> to vector<16x128xi1>
    %72 = arith.select %71, %66, %36 : vector<16x128xi1>, vector<16x128xf32>
    %73 = arith.select %71, %64, %37 : vector<16x128xi1>, vector<16x128xf32>
    %cst_19 = arith.constant 0.000000e+00 : f32
    %74 = vector.broadcast %cst_19 : f32 to vector<16x128xf32>
    %75 = arith.select %71, %66, %74 : vector<16x128xi1>, vector<16x128xf32>
    %76 = arith.index_cast %c1_i32 : i32 to index
    %c0_20 = arith.constant 0 : index
    %c0_21 = arith.constant 0 : index
    %77 = vector.load %arg5[%76, %c0_20, %c0_21] : memref<4x16x128xf32, #tpu.memory_space<vmem>>, vector<1x16x128xf32>
    %78 = vector.shape_cast %77 : vector<1x16x128xf32> to vector<16x128xf32>
    %79 = vector.shape_cast %75 : vector<16x128xf32> to vector<1x16x128xf32>
    tpu.vector_store %arg5[%76, %c0_20, %c0_21], %79 {strides = array<i32>} : memref<4x16x128xf32, #tpu.memory_space<vmem>>, vector<1x16x128xf32>,
    %c2_i32 = arith.constant 2 : i32
    %80 = arith.index_cast %c2_i32 : i32 to index
    %c0_22 = arith.constant 0 : index
    %c0_23 = arith.constant 0 : index
    %81 = vector.load %arg3[%80, %c0_22, %c0_23] : memref<4x16x512xbf16, #tpu.memory_space<vmem>>, vector<1x16x512xbf16>
    %82 = vector.shape_cast %81 : vector<1x16x512xbf16> to vector<16x512xbf16>
    %83 = arith.extf %82 : vector<16x512xbf16> to vector<16x512xf32>
    %84 = arith.truncf %72 : vector<16x128xf32> to vector<16x128xbf16>
    %cst_24 = arith.constant dense<0.000000e+00> : vector<16x512xf32>
    %85 = tpu.matmul %84, %4, %cst_24 {dimension_numbers = #tpu.dot_dimension_numbers<[1], [0], [0], [1], [0, 0, 1, 1], [], []>} : vector<16x128xbf16>, vector<128x512xbf16>, vector<16x512xf32> -> vector<16x512xf32>
    %86 = arith.addf %83, %85 : vector<16x512xf32>
    %87 = vector.extract_strided_slice %86 {offsets = [0, 0], sizes = [16, 384], strides = [1, 1]} : vector<16x512xf32> to vector<16x384xf32>
    %88 = arith.negf %87 : vector<16x384xf32>
    %89 = math.exp %88 : vector<16x384xf32>
    %cst_25 = arith.constant 1.000000e+00 : f32
    %90 = vector.broadcast %cst_25 : f32 to vector<16x384xf32>
    %91 = arith.addf %90, %89 : vector<16x384xf32>
    %92 = arith.divf %90, %91 : vector<16x384xf32>
    %93 = vector.extract_strided_slice %86 {offsets = [0, 384], sizes = [16, 128], strides = [1, 1]} : vector<16x512xf32> to vector<16x128xf32>
    %94 = math.tanh %93 : vector<16x128xf32>
    %95 = vector.extract_strided_slice %92 {offsets = [0, 0], sizes = [16, 128], strides = [1, 1]} : vector<16x384xf32> to vector<16x128xf32>
    %96 = vector.extract_strided_slice %92 {offsets = [0, 128], sizes = [16, 128], strides = [1, 1]} : vector<16x384xf32> to vector<16x128xf32>
    %97 = vector.extract_strided_slice %92 {offsets = [0, 256], sizes = [16, 128], strides = [1, 1]} : vector<16x384xf32> to vector<16x128xf32>
    %98 = arith.mulf %96, %73 : vector<16x128xf32>
    %99 = arith.mulf %95, %94 : vector<16x128xf32>
    %100 = arith.addf %98, %99 : vector<16x128xf32>
    %101 = math.tanh %100 : vector<16x128xf32>
    %102 = arith.mulf %97, %101 : vector<16x128xf32>
    %103 = arith.addi %5, %c2_i32 : i32
    %104 = vector.broadcast %103 : i32 to vector<16x1xi32>
    %105 = arith.cmpi slt, %104, %3 : vector<16x1xi32>
    %106 = vector.shape_cast %105 : vector<16x1xi1> to vector<16x1xi1>
    %107 = vector.broadcast %106 : vector<16x1xi1> to vector<16x128xi1>
    %108 = arith.select %107, %102, %72 : vector<16x128xi1>, vector<16x128xf32>
    %109 = arith.select %107, %100, %73 : vector<16x128xi1>, vector<16x128xf32>
    %cst_26 = arith.constant 0.000000e+00 : f32
    %110 = vector.broadcast %cst_26 : f32 to vector<16x128xf32>
    %111 = arith.select %107, %102, %110 : vector<16x128xi1>, vector<16x128xf32>
    %112 = arith.index_cast %c2_i32 : i32 to index
    %c0_27 = arith.constant 0 : index
    %c0_28 = arith.constant 0 : index
    %113 = vector.load %arg5[%112, %c0_27, %c0_28] : memref<4x16x128xf32, #tpu.memory_space<vmem>>, vector<1x16x128xf32>
    %114 = vector.shape_cast %113 : vector<1x16x128xf32> to vector<16x128xf32>
    %115 = vector.shape_cast %111 : vector<16x128xf32> to vector<1x16x128xf32>
    tpu.vector_store %arg5[%112, %c0_27, %c0_28], %115 {strides = array<i32>} : memref<4x16x128xf32, #tpu.memory_space<vmem>>, vector<1x16x128xf32>,
    %c3_i32 = arith.constant 3 : i32
    %116 = arith.index_cast %c3_i32 : i32 to index
    %c0_29 = arith.constant 0 : index
    %c0_30 = arith.constant 0 : index
    %117 = vector.load %arg3[%116, %c0_29, %c0_30] : memref<4x16x512xbf16, #tpu.memory_space<vmem>>, vector<1x16x512xbf16>
    %118 = vector.shape_cast %117 : vector<1x16x512xbf16> to vector<16x512xbf16>
    %119 = arith.extf %118 : vector<16x512xbf16> to vector<16x512xf32>
    %120 = arith.truncf %108 : vector<16x128xf32> to vector<16x128xbf16>
    %cst_31 = arith.constant dense<0.000000e+00> : vector<16x512xf32>
    %121 = tpu.matmul %120, %4, %cst_31 {dimension_numbers = #tpu.dot_dimension_numbers<[1], [0], [0], [1], [0, 0, 1, 1], [], []>} : vector<16x128xbf16>, vector<128x512xbf16>, vector<16x512xf32> -> vector<16x512xf32>
    %122 = arith.addf %119, %121 : vector<16x512xf32>
    %123 = vector.extract_strided_slice %122 {offsets = [0, 0], sizes = [16, 384], strides = [1, 1]} : vector<16x512xf32> to vector<16x384xf32>
    %124 = arith.negf %123 : vector<16x384xf32>
    %125 = math.exp %124 : vector<16x384xf32>
    %cst_32 = arith.constant 1.000000e+00 : f32
    %126 = vector.broadcast %cst_32 : f32 to vector<16x384xf32>
    %127 = arith.addf %126, %125 : vector<16x384xf32>
    %128 = arith.divf %126, %127 : vector<16x384xf32>
    %129 = vector.extract_strided_slice %122 {offsets = [0, 384], sizes = [16, 128], strides = [1, 1]} : vector<16x512xf32> to vector<16x128xf32>
    %130 = math.tanh %129 : vector<16x128xf32>
    %131 = vector.extract_strided_slice %128 {offsets = [0, 0], sizes = [16, 128], strides = [1, 1]} : vector<16x384xf32> to vector<16x128xf32>
    %132 = vector.extract_strided_slice %128 {offsets = [0, 128], sizes = [16, 128], strides = [1, 1]} : vector<16x384xf32> to vector<16x128xf32>
    %133 = vector.extract_strided_slice %128 {offsets = [0, 256], sizes = [16, 128], strides = [1, 1]} : vector<16x384xf32> to vector<16x128xf32>
    %134 = arith.mulf %132, %109 : vector<16x128xf32>
    %135 = arith.mulf %131, %130 : vector<16x128xf32>
    %136 = arith.addf %134, %135 : vector<16x128xf32>
    %137 = math.tanh %136 : vector<16x128xf32>
    %138 = arith.mulf %133, %137 : vector<16x128xf32>
    %139 = arith.addi %5, %c3_i32 : i32
    %140 = vector.broadcast %139 : i32 to vector<16x1xi32>
    %141 = arith.cmpi slt, %140, %3 : vector<16x1xi32>
    %142 = vector.shape_cast %141 : vector<16x1xi1> to vector<16x1xi1>
    %143 = vector.broadcast %142 : vector<16x1xi1> to vector<16x128xi1>
    %144 = arith.select %143, %138, %108 : vector<16x128xi1>, vector<16x128xf32>
    %145 = arith.select %143, %136, %109 : vector<16x128xi1>, vector<16x128xf32>
    %cst_33 = arith.constant 0.000000e+00 : f32
    %146 = vector.broadcast %cst_33 : f32 to vector<16x128xf32>
    %147 = arith.select %143, %138, %146 : vector<16x128xi1>, vector<16x128xf32>
    %148 = arith.index_cast %c3_i32 : i32 to index
    %c0_34 = arith.constant 0 : index
    %c0_35 = arith.constant 0 : index
    %149 = vector.load %arg5[%148, %c0_34, %c0_35] : memref<4x16x128xf32, #tpu.memory_space<vmem>>, vector<1x16x128xf32>
    %150 = vector.shape_cast %149 : vector<1x16x128xf32> to vector<16x128xf32>
    %151 = vector.shape_cast %147 : vector<16x128xf32> to vector<1x16x128xf32>
    tpu.vector_store %arg5[%148, %c0_34, %c0_35], %151 {strides = array<i32>} : memref<4x16x128xf32, #tpu.memory_space<vmem>>, vector<1x16x128xf32>,
    %c4_i32_36 = arith.constant 4 : i32
    %c0_37 = arith.constant 0 : index
    %c0_38 = arith.constant 0 : index
    %152 = vector.load %arg6[%c0_37, %c0_38] : memref<16x128xf32, #tpu.memory_space<vmem>>, vector<16x128xf32>
    tpu.vector_store %arg6[%c0_37, %c0_38], %144 {strides = array<i32>} : memref<16x128xf32, #tpu.memory_space<vmem>>, vector<16x128xf32>,
    %c0_39 = arith.constant 0 : index
    %c0_40 = arith.constant 0 : index
    %153 = vector.load %arg7[%c0_39, %c0_40] : memref<16x128xf32, #tpu.memory_space<vmem>>, vector<16x128xf32>
    tpu.vector_store %arg7[%c0_39, %c0_40], %145 {strides = array<i32>} : memref<16x128xf32, #tpu.memory_space<vmem>>, vector<16x128xf32>,
    return
  }
  func.func @transform_0(%arg0: i32, %arg1: i32) -> (i32, i32) {
    %c0_i32 = arith.constant 0 : i32
    %c0_i32_0 = arith.constant 0 : i32
    return %arg0, %c0_i32 : i32, i32
  }
  func.func @transform_1(%arg0: i32, %arg1: i32) -> (i32, i32, i32) {
    %c0_i32 = arith.constant 0 : i32
    %c0_i32_0 = arith.constant 0 : i32
    return %arg1, %arg0, %c0_i32 : i32, i32, i32
  }
  func.func @transform_2(%arg0: i32, %arg1: i32) -> (i32, i32) {
    %c0_i32 = arith.constant 0 : i32
    %c0_i32_0 = arith.constant 0 : i32
    %c0_i32_1 = arith.constant 0 : i32
    return %c0_i32, %c0_i32_0 : i32, i32
  }
  func.func @transform_3(%arg0: i32, %arg1: i32) -> (i32, i32, i32) {
    %c0_i32 = arith.constant 0 : i32
    %c0_i32_0 = arith.constant 0 : i32
    return %arg1, %arg0, %c0_i32 : i32, i32, i32
  }
}

</mosaic_0001>

<bundles_post_ra>
// kernel: batch_rnn_forward.2
= control target key start
LH: loop header
LB: loop body
LE: loop exit
PB: predicated region body
PF: predicated region fallthrough
CT: control target
= control target key end

     0   :  { %v709_v1 = vmov 0   ;;  %vm137_vm0 = vcmask 130048   ;;  %v97_v63 = vlaneseq  ;;  %s1045_s3 = inlined_call_operand.vmem [shape: bf16[16,512], index: 3, kind: input, shape index: {}]   ;;  %s1046_s0 = inlined_call_operand.vmem [shape: f32[128,16], index: 0, kind: input, shape index: {}]   ;;  %s1047_s1 = inlined_call_operand.vmem [shape: f32[1,16], index: 1, kind: input, shape index: {}]   ;;  %s1048_s2 = inlined_call_operand.vmem [shape: f32[1,16], index: 2, kind: input, shape index: {}]   ;;  %s1049_s4 = inlined_call_operand.vmem [shape: f32[1,512], index: 4, kind: input, shape index: {}]   ;;  %s1050_s5 = inlined_call_operand.vmem [shape: bf16[128,512], index: 5, kind: output, shape index: {}]  }
   0x1   :  { %v703_v0 = vld [vmem:[%s1045_s3 + $0x4] ss:$16 sps:$4 sm:$0xff]   ;;  %194 = vmatprep.mubr.bf16.mxu0 %v709_v1  ;;  %307 = vmatprep.mubr.bf16.mxu1 %v709_v1  ;;  %v705_v2 = vld [vmem:[%s1045_s3 + $0xc] ss:$16 sps:$4 sm:$0xff]   ;;  %v707_v3 = vld [vmem:[%s1045_s3] ss:$16 sps:$4 sm:$0xff]  }
   0x2   :  { %176 = vmatprep.subr.bf16.mxu0 %v703_v0  ;;  %v708_v4 = vld [vmem:[%s1045_s3 + $0x8] ss:$16 sps:$4 sm:$0xff]   ;;  %v21_v5 = vld [vmem:[%s1046_s0] sm:$0xff]  ;;  %289 = vmatprep.subr.bf16.mxu1 %v705_v2  ;;  %v23_v11 = vld [vmem:[%s1046_s0 + $0x10] sm:$0xff]  ;;  %v98_v0 = vshrl.u32 %v97_v63, 7 }
   0x3   :  { %v22_v6 = vld [vmem:[%s1046_s0 + $0x8] sm:$0xff]  ;;  %v763_v7 = vld [vmem:[%s1047_s1] ss:$0 sm:$0xff]  ;;  %177 = vmatpush1.bf16.msra.mxu0 %v707_v3  ;;  %290 = vmatpush1.bf16.msra.mxu1 %v708_v4  ;;  %v24_v12 = vld [vmem:[%s1046_s0 + $0x18] sm:$0xff] }
   0x4   :  { %v768_v8 = vld [vmem:[%s1048_s2] ss:$0 sm:$0xff]  ;;  %v44_v9 = vmul.f32 %v763_v7, %v21_v5  ;;  %v45_v10 = vmul.f32 %v763_v7, %v22_v6  ;;  %v46_v15 = vmul.f32 %v763_v7, %v23_v11  ;;  %v47_v16 = vmul.f32 %v763_v7, %v24_v12  ;;  %v26_v21 = vld [vmem:[%s1046_s0 + $0x28] sm:$0xff]  ;;  %v27_v27 = vld [vmem:[%s1046_s0 + $0x30] sm:$0xff] }
   0x5   :  { %v25_v20 = vld [vmem:[%s1046_s0 + $0x20] sm:$0xff]  ;;  %v49_v24 = vmul.f32 %v763_v7, %v26_v21  ;;  %v28_v28 = vld [vmem:[%s1046_s0 + $0x38] sm:$0xff]  ;;  %v50_v30 = vmul.f32 %v763_v7, %v27_v27  ;;  %v30_v35 = vld [vmem:[%s1046_s0 + $0x48] sm:$0xff]  ;;  %v99_v2 = vsub.s32 0, %v98_v0  ;;  %v107_v3 = vsub.s32 2, %v98_v0 }
   0x6   :  { %v67_v13 = vadd.f32 %v768_v8, %v44_v9  ;;  %v68_v14 = vadd.f32 %v768_v8, %v45_v10  ;;  %v69_v18 = vadd.f32 %v768_v8, %v46_v15  ;;  %v70_v19 = vadd.f32 %v768_v8, %v47_v16  ;;  %v29_v34 = vld [vmem:[%s1046_s0 + $0x40] sm:$0xff]  ;;  %v31_v41 = vld [vmem:[%s1046_s0 + $0x50] sm:$0xff]  ;;  %v32_v42 = vld [vmem:[%s1046_s0 + $0x58] sm:$0xff] }
   0x7   :  { %v48_v23 = vmul.f32 %v763_v7, %v25_v20  ;;  %v72_v26 = vadd.f32 %v768_v8, %v49_v24  ;;  %v51_v31 = vmul.f32 %v763_v7, %v28_v28  ;;  %v73_v32 = vadd.f32 %v768_v8, %v50_v30  ;;  %v33_v48 = vld [vmem:[%s1046_s0 + $0x60] sm:$0xff]  ;;  %v34_v49 = vld [vmem:[%s1046_s0 + $0x68] sm:$0xff]  ;;  %v35_v55 = vld [vmem:[%s1046_s0 + $0x70] sm:$0xff] }
   0x8   :  { %v83_v17 = vpack.c.bf16 %v68_v14, %v67_v13  ;;  %v84_v22 = vpack.c.bf16 %v70_v19, %v69_v18  ;;  %v52_v37 = vmul.f32 %v763_v7, %v29_v34  ;;  %v53_v38 = vmul.f32 %v763_v7, %v30_v35  ;;  %v36_v56 = vld [vmem:[%s1046_s0 + $0x78] sm:$0xff]  ;;  %v95_v6 = vld [vmem:[%s1049_s4] sm:$0xf] }
   0x9   :  { %v71_v25 = vadd.f32 %v768_v8, %v48_v23  ;;  %v74_v33 = vadd.f32 %v768_v8, %v51_v31  ;;  %v54_v44 = vmul.f32 %v763_v7, %v31_v41  ;;  %v55_v45 = vmul.f32 %v763_v7, %v32_v42 }
   0xa   :  { %622 = vmatmul.mubr.msk.bf16.vlgmr.msra.gmra.mxu0 %vm137_vm0, %v83_v17  ;;  %630 = vmatmul.mubr.msk.bf16.vlgmr.msra.gmra.mxu1 %vm137_vm0, %v83_v17  ;;  %v75_v39 = vadd.f32 %v768_v8, %v52_v37  ;;  %v76_v40 = vadd.f32 %v768_v8, %v53_v38  ;;  %v56_v51 = vmul.f32 %v763_v7, %v33_v48  ;;  %v103_v4 = vsub.s32 1, %v98_v0 }
   0xb   :  { %204 = vmatprep.mubr.bf16.mxu0 %v709_v1  ;;  %317 = vmatprep.mubr.bf16.mxu1 %v709_v1  ;;  %v85_v29 = vpack.c.bf16 %v72_v26, %v71_v25  ;;  %v86_v36 = vpack.c.bf16 %v74_v33, %v73_v32  ;;  %v77_v46 = vadd.f32 %v768_v8, %v54_v44  ;;  %v111_v5 = vsub.s32 3, %v98_v0 }
   0xc   :  { %v87_v43 = vpack.c.bf16 %v76_v40, %v75_v39  ;;  %v78_v47 = vadd.f32 %v768_v8, %v55_v45  ;;  %v57_v52 = vmul.f32 %v763_v7, %v34_v49  ;;  %v79_v53 = vadd.f32 %v768_v8, %v56_v51 }
   0xd   :  { %v58_v58 = vmul.f32 %v763_v7, %v35_v55  ;;  %v59_v59 = vmul.f32 %v763_v7, %v36_v56  ;;  %v877_v7 = vrot.slane %v95_v6, %v99_v2  ;;  %v883_v9 = vrot.slane %v95_v6, %v111_v5 }
   0xe   :  { %v88_v50 = vpack.c.bf16 %v78_v47, %v77_v46  ;;  %v80_v54 = vadd.f32 %v768_v8, %v57_v52 }
   0xf   :  { %v81_v60 = vadd.f32 %v768_v8, %v58_v58  ;;  %v82_v61 = vadd.f32 %v768_v8, %v59_v59  ;;  %v879_v8 = vrot.slane %v95_v6, %v107_v3 }
  0x10   :  { %v89_v57 = vpack.c.bf16 %v80_v54, %v79_v53 }
  0x11   :  { %v90_v62 = vpack.c.bf16 %v82_v61, %v81_v60 }
  0x12   :  { %623 = vmatmul.mubr.msk.bf16.gmra.mxu0 %vm137_vm0, %v84_v22  ;;  %631 = vmatmul.mubr.msk.bf16.gmra.mxu1 %vm137_vm0, %v84_v22 }
  0x13   :  { %214 = vmatprep.mubr.bf16.mxu0 %v709_v1  ;;  %327 = vmatprep.mubr.bf16.mxu1 %v709_v1 }
  0x1a   :  { %624 = vmatmul.mubr.msk.bf16.gmra.mxu0 %vm137_vm0, %v85_v29  ;;  %632 = vmatmul.mubr.msk.bf16.gmra.mxu1 %vm137_vm0, %v85_v29 }
  0x1b   :  { %224 = vmatprep.mubr.bf16.mxu0 %v709_v1  ;;  %337 = vmatprep.mubr.bf16.mxu1 %v709_v1 }
  0x22   :  { %625 = vmatmul.mubr.msk.bf16.gmra.mxu0 %vm137_vm0, %v86_v36  ;;  %633 = vmatmul.mubr.msk.bf16.gmra.mxu1 %vm137_vm0, %v86_v36 }
  0x23   :  { %234 = vmatprep.mubr.bf16.mxu0 %v709_v1  ;;  %347 = vmatprep.mubr.bf16.mxu1 %v709_v1 }
  0x2a   :  { %626 = vmatmul.mubr.msk.bf16.gmra.mxu0 %vm137_vm0, %v87_v43  ;;  %634 = vmatmul.mubr.msk.bf16.gmra.mxu1 %vm137_vm0, %v87_v43 }
  0x2b   :  { %244 = vmatprep.mubr.bf16.mxu0 %v709_v1  ;;  %357 = vmatprep.mubr.bf16.mxu1 %v709_v1 }
  0x32   :  { %627 = vmatmul.mubr.msk.bf16.gmra.mxu0 %vm137_vm0, %v88_v50  ;;  %635 = vmatmul.mubr.msk.bf16.gmra.mxu1 %vm137_vm0, %v88_v50 }
  0x33   :  { %254 = vmatprep.mubr.bf16.mxu0 %v709_v1  ;;  %367 = vmatprep.mubr.bf16.mxu1 %v709_v1 }
  0x3a   :  { %628 = vmatmul.mubr.msk.bf16.gmra.mxu0 %vm137_vm0, %v89_v57  ;;  %636 = vmatmul.mubr.msk.bf16.gmra.mxu1 %vm137_vm0, %v89_v57 }
  0x3b   :  { %264 = vmatprep.mubr.bf16.mxu0 %v709_v1  ;;  %377 = vmatprep.mubr.bf16.mxu1 %v709_v1  ;;  %v881_v1 = vrot.slane %v95_v6, %v103_v4 }
  0x42   :  { %629 = vmatmul.mubr.msk.bf16.gmra.mxu0 %vm137_vm0, %v90_v62  ;;  %637 = vmatmul.mubr.msk.bf16.gmra.mxu1 %vm137_vm0, %v90_v62 }
  0xca   :  { %v196_v10 = vpop.f32.mrf.mxu0  ;;  %v309_v11 = vpop.f32.mrf.mxu1 }
  0xcb   :  { %v197_v14 = vadd.f32 %v196_v10, %v877_v7  ;;  %v310_v15 = vadd.f32 %v309_v11, %v879_v8 }
  0xcc   :  { %v198_v12 = vpop.f32.mrf.mxu0  ;;  %v311_v13 = vpop.f32.mrf.mxu1 }
  0xcd   :  { %v199_v16 = vadd.f32 %v198_v12, %v881_v1  ;;  %v312_v17 = vadd.f32 %v311_v13, %v883_v9 }
  0xce   :  { %v200_v18 = vpop.f32.mrf.mxu0  ;;  %v313_v19 = vpop.f32.mrf.mxu1 }
  0xcf   :  { %v670_v20 = vpack.c.bf16 %v199_v16, %v197_v14  ;;  %v671_v21 = vpack.c.bf16 %v312_v17, %v310_v15  ;;  %v201_v24 = vadd.f32 %v200_v18, %v877_v7  ;;  %v314_v25 = vadd.f32 %v313_v19, %v879_v8 }
  0xd0   :  { %v202_v22 = vpop.f32.mrf.mxu0  ;;  %v315_v23 = vpop.f32.mrf.mxu1 }
  0xd1   :  { %580 = vst [vmem:[%s1050_s5] sm:$0xff] %v670_v20  ;;  %581 = vst [vmem:[%s1050_s5 + $0x8] sm:$0xff] %v671_v21  ;;  %v203_v26 = vadd.f32 %v202_v22, %v881_v1  ;;  %v316_v27 = vadd.f32 %v315_v23, %v883_v9 }
  0xd2   :  { %v206_v28 = vpop.f32.mrf.mxu0  ;;  %v319_v29 = vpop.f32.mrf.mxu1 }
  0xd3   :  { %v672_v30 = vpack.c.bf16 %v203_v26, %v201_v24  ;;  %v673_v31 = vpack.c.bf16 %v316_v27, %v314_v25  ;;  %v207_v34 = vadd.f32 %v206_v28, %v877_v7  ;;  %v320_v35 = vadd.f32 %v319_v29, %v879_v8 }
  0xd4   :  { %v208_v32 = vpop.f32.mrf.mxu0  ;;  %v321_v33 = vpop.f32.mrf.mxu1 }
  0xd5   :  { %582 = vst [vmem:[%s1050_s5 + $0x10] sm:$0xff] %v672_v30  ;;  %583 = vst [vmem:[%s1050_s5 + $0x18] sm:$0xff] %v673_v31  ;;  %v209_v36 = vadd.f32 %v208_v32, %v881_v1  ;;  %v322_v37 = vadd.f32 %v321_v33, %v883_v9 }
  0xd6   :  { %v210_v38 = vpop.f32.mrf.mxu0  ;;  %v323_v39 = vpop.f32.mrf.mxu1 }
  0xd7   :  { %v674_v40 = vpack.c.bf16 %v209_v36, %v207_v34  ;;  %v675_v41 = vpack.c.bf16 %v322_v37, %v320_v35  ;;  %v211_v44 = vadd.f32 %v210_v38, %v877_v7  ;;  %v324_v45 = vadd.f32 %v323_v39, %v879_v8 }
  0xd8   :  { %v212_v42 = vpop.f32.mrf.mxu0  ;;  %v325_v43 = vpop.f32.mrf.mxu1 }
  0xd9   :  { %584 = vst [vmem:[%s1050_s5 + $0x20] sm:$0xff] %v674_v40  ;;  %585 = vst [vmem:[%s1050_s5 + $0x28] sm:$0xff] %v675_v41  ;;  %v213_v46 = vadd.f32 %v212_v42, %v881_v1  ;;  %v326_v47 = vadd.f32 %v325_v43, %v883_v9 }
  0xda   :  { %v216_v48 = vpop.f32.mrf.mxu0  ;;  %v329_v49 = vpop.f32.mrf.mxu1 }
  0xdb   :  { %v676_v50 = vpack.c.bf16 %v213_v46, %v211_v44  ;;  %v677_v51 = vpack.c.bf16 %v326_v47, %v324_v45  ;;  %v217_v54 = vadd.f32 %v216_v48, %v877_v7  ;;  %v330_v55 = vadd.f32 %v329_v49, %v879_v8 }
  0xdc   :  { %v218_v52 = vpop.f32.mrf.mxu0  ;;  %v331_v53 = vpop.f32.mrf.mxu1 }
  0xdd   :  { %586 = vst [vmem:[%s1050_s5 + $0x30] sm:$0xff] %v676_v50  ;;  %587 = vst [vmem:[%s1050_s5 + $0x38] sm:$0xff] %v677_v51  ;;  %v219_v56 = vadd.f32 %v218_v52, %v881_v1  ;;  %v332_v57 = vadd.f32 %v331_v53, %v883_v9 }
  0xde   :  { %v220_v58 = vpop.f32.mrf.mxu0  ;;  %v333_v59 = vpop.f32.mrf.mxu1 }
  0xdf   :  { %v678_v60 = vpack.c.bf16 %v219_v56, %v217_v54  ;;  %v679_v61 = vpack.c.bf16 %v332_v57, %v330_v55  ;;  %v221_v0 = vadd.f32 %v220_v58, %v877_v7  ;;  %v334_v2 = vadd.f32 %v333_v59, %v879_v8 }
  0xe0   :  { %v222_v62 = vpop.f32.mrf.mxu0  ;;  %v335_v63 = vpop.f32.mrf.mxu1 }
  0xe1   :  { %588 = vst [vmem:[%s1050_s5 + $0x40] sm:$0xff] %v678_v60  ;;  %589 = vst [vmem:[%s1050_s5 + $0x48] sm:$0xff] %v679_v61  ;;  %v223_v3 = vadd.f32 %v222_v62, %v881_v1  ;;  %v336_v4 = vadd.f32 %v335_v63, %v883_v9 }
  0xe2   :  { %v226_v5 = vpop.f32.mrf.mxu0  ;;  %v339_v6 = vpop.f32.mrf.mxu1 }
  0xe3   :  { %v680_v10 = vpack.c.bf16 %v223_v3, %v221_v0  ;;  %v681_v11 = vpack.c.bf16 %v336_v4, %v334_v2  ;;  %v227_v14 = vadd.f32 %v226_v5, %v877_v7  ;;  %v340_v15 = vadd.f32 %v339_v6, %v879_v8 }
  0xe4   :  { %v228_v12 = vpop.f32.mrf.mxu0  ;;  %v341_v13 = vpop.f32.mrf.mxu1 }
  0xe5   :  { %590 = vst [vmem:[%s1050_s5 + $0x50] sm:$0xff] %v680_v10  ;;  %591 = vst [vmem:[%s1050_s5 + $0x58] sm:$0xff] %v681_v11  ;;  %v229_v16 = vadd.f32 %v228_v12, %v881_v1  ;;  %v342_v17 = vadd.f32 %v341_v13, %v883_v9 }
  0xe6   :  { %v230_v18 = vpop.f32.mrf.mxu0  ;;  %v343_v19 = vpop.f32.mrf.mxu1 }
  0xe7   :  { %v682_v20 = vpack.c.bf16 %v229_v16, %v227_v14  ;;  %v683_v21 = vpack.c.bf16 %v342_v17, %v340_v15  ;;  %v231_v24 = vadd.f32 %v230_v18, %v877_v7  ;;  %v344_v25 = vadd.f32 %v343_v19, %v879_v8 }
  0xe8   :  { %v232_v22 = vpop.f32.mrf.mxu0  ;;  %v345_v23 = vpop.f32.mrf.mxu1 }
  0xe9   :  { %592 = vst [vmem:[%s1050_s5 + $0x60] sm:$0xff] %v682_v20  ;;  %593 = vst [vmem:[%s1050_s5 + $0x68] sm:$0xff] %v683_v21  ;;  %v233_v26 = vadd.f32 %v232_v22, %v881_v1  ;;  %v346_v27 = vadd.f32 %v345_v23, %v883_v9 }
  0xea   :  { %v236_v28 = vpop.f32.mrf.mxu0  ;;  %v349_v29 = vpop.f32.mrf.mxu1 }
  0xeb   :  { %v684_v30 = vpack.c.bf16 %v233_v26, %v231_v24  ;;  %v685_v31 = vpack.c.bf16 %v346_v27, %v344_v25  ;;  %v237_v34 = vadd.f32 %v236_v28, %v877_v7  ;;  %v350_v35 = vadd.f32 %v349_v29, %v879_v8 }
  0xec   :  { %v238_v32 = vpop.f32.mrf.mxu0  ;;  %v351_v33 = vpop.f32.mrf.mxu1 }
  0xed   :  { %594 = vst [vmem:[%s1050_s5 + $0x70] sm:$0xff] %v684_v30  ;;  %595 = vst [vmem:[%s1050_s5 + $0x78] sm:$0xff] %v685_v31  ;;  %v239_v36 = vadd.f32 %v238_v32, %v881_v1  ;;  %v352_v37 = vadd.f32 %v351_v33, %v883_v9 }
  0xee   :  { %v240_v38 = vpop.f32.mrf.mxu0  ;;  %v353_v39 = vpop.f32.mrf.mxu1 }
  0xef   :  { %v686_v40 = vpack.c.bf16 %v239_v36, %v237_v34  ;;  %v687_v41 = vpack.c.bf16 %v352_v37, %v350_v35  ;;  %v241_v44 = vadd.f32 %v240_v38, %v877_v7  ;;  %v354_v45 = vadd.f32 %v353_v39, %v879_v8 }
  0xf0   :  { %v242_v42 = vpop.f32.mrf.mxu0  ;;  %v355_v43 = vpop.f32.mrf.mxu1 }
  0xf1   :  { %596 = vst [vmem:[%s1050_s5 + $0x80] sm:$0xff] %v686_v40  ;;  %597 = vst [vmem:[%s1050_s5 + $0x88] sm:$0xff] %v687_v41  ;;  %v243_v46 = vadd.f32 %v242_v42, %v881_v1  ;;  %v356_v47 = vadd.f32 %v355_v43, %v883_v9 }
  0xf2   :  { %v246_v48 = vpop.f32.mrf.mxu0  ;;  %v359_v49 = vpop.f32.mrf.mxu1 }
  0xf3   :  { %v688_v50 = vpack.c.bf16 %v243_v46, %v241_v44  ;;  %v689_v51 = vpack.c.bf16 %v356_v47, %v354_v45  ;;  %v247_v54 = vadd.f32 %v246_v48, %v877_v7  ;;  %v360_v55 = vadd.f32 %v359_v49, %v879_v8 }
  0xf4   :  { %v248_v52 = vpop.f32.mrf.mxu0  ;;  %v361_v53 = vpop.f32.mrf.mxu1 }
  0xf5   :  { %598 = vst [vmem:[%s1050_s5 + $0x90] sm:$0xff] %v688_v50  ;;  %599 = vst [vmem:[%s1050_s5 + $0x98] sm:$0xff] %v689_v51  ;;  %v249_v56 = vadd.f32 %v248_v52, %v881_v1  ;;  %v362_v57 = vadd.f32 %v361_v53, %v883_v9 }
  0xf6   :  { %v250_v58 = vpop.f32.mrf.mxu0  ;;  %v363_v59 = vpop.f32.mrf.mxu1 }
  0xf7   :  { %v690_v60 = vpack.c.bf16 %v249_v56, %v247_v54  ;;  %v691_v61 = vpack.c.bf16 %v362_v57, %v360_v55  ;;  %v251_v0 = vadd.f32 %v250_v58, %v877_v7  ;;  %v364_v2 = vadd.f32 %v363_v59, %v879_v8 }
  0xf8   :  { %v252_v62 = vpop.f32.mrf.mxu0  ;;  %v365_v63 = vpop.f32.mrf.mxu1 }
  0xf9   :  { %600 = vst [vmem:[%s1050_s5 + $0xa0] sm:$0xff] %v690_v60  ;;  %601 = vst [vmem:[%s1050_s5 + $0xa8] sm:$0xff] %v691_v61  ;;  %v253_v3 = vadd.f32 %v252_v62, %v881_v1  ;;  %v366_v4 = vadd.f32 %v365_v63, %v883_v9 }
  0xfa   :  { %v256_v5 = vpop.f32.mrf.mxu0  ;;  %v369_v6 = vpop.f32.mrf.mxu1 }
  0xfb   :  { %v692_v10 = vpack.c.bf16 %v253_v3, %v251_v0  ;;  %v693_v11 = vpack.c.bf16 %v366_v4, %v364_v2  ;;  %v257_v14 = vadd.f32 %v256_v5, %v877_v7  ;;  %v370_v15 = vadd.f32 %v369_v6, %v879_v8 }
  0xfc   :  { %v258_v12 = vpop.f32.mrf.mxu0  ;;  %v371_v13 = vpop.f32.mrf.mxu1 }
  0xfd   :  { %602 = vst [vmem:[%s1050_s5 + $0xb0] sm:$0xff] %v692_v10  ;;  %603 = vst [vmem:[%s1050_s5 + $0xb8] sm:$0xff] %v693_v11  ;;  %v259_v16 = vadd.f32 %v258_v12, %v881_v1  ;;  %v372_v17 = vadd.f32 %v371_v13, %v883_v9 }
  0xfe   :  { %v260_v18 = vpop.f32.mrf.mxu0  ;;  %v373_v19 = vpop.f32.mrf.mxu1 }
  0xff   :  { %v694_v20 = vpack.c.bf16 %v259_v16, %v257_v14  ;;  %v695_v21 = vpack.c.bf16 %v372_v17, %v370_v15  ;;  %v261_v24 = vadd.f32 %v260_v18, %v877_v7  ;;  %v374_v25 = vadd.f32 %v373_v19, %v879_v8 }
 0x100   :  { %v262_v22 = vpop.f32.mrf.mxu0  ;;  %v375_v23 = vpop.f32.mrf.mxu1 }
 0x101   :  { %604 = vst [vmem:[%s1050_s5 + $0xc0] sm:$0xff] %v694_v20  ;;  %605 = vst [vmem:[%s1050_s5 + $0xc8] sm:$0xff] %v695_v21  ;;  %v263_v26 = vadd.f32 %v262_v22, %v881_v1  ;;  %v376_v27 = vadd.f32 %v375_v23, %v883_v9 }
 0x102   :  { %v266_v28 = vpop.f32.mrf.mxu0  ;;  %v379_v29 = vpop.f32.mrf.mxu1 }
 0x103   :  { %v696_v30 = vpack.c.bf16 %v263_v26, %v261_v24  ;;  %v697_v31 = vpack.c.bf16 %v376_v27, %v374_v25  ;;  %v267_v34 = vadd.f32 %v266_v28, %v877_v7  ;;  %v380_v35 = vadd.f32 %v379_v29, %v879_v8 }
 0x104   :  { %v268_v32 = vpop.f32.mrf.mxu0  ;;  %v381_v33 = vpop.f32.mrf.mxu1 }
 0x105   :  { %606 = vst [vmem:[%s1050_s5 + $0xd0] sm:$0xff] %v696_v30  ;;  %607 = vst [vmem:[%s1050_s5 + $0xd8] sm:$0xff] %v697_v31  ;;  %v269_v36 = vadd.f32 %v268_v32, %v881_v1  ;;  %v382_v37 = vadd.f32 %v381_v33, %v883_v9 }
 0x106   :  { %v270_v38 = vpop.f32.mrf.mxu0  ;;  %v383_v39 = vpop.f32.mrf.mxu1 }
 0x107   :  { %v698_v40 = vpack.c.bf16 %v269_v36, %v267_v34  ;;  %v699_v41 = vpack.c.bf16 %v382_v37, %v380_v35  ;;  %v271_v44 = vadd.f32 %v270_v38, %v877_v7  ;;  %v384_v45 = vadd.f32 %v383_v39, %v879_v8 }
 0x108   :  { %v272_v42 = vpop.f32.mrf.mxu0  ;;  %v385_v43 = vpop.f32.mrf.mxu1 }
 0x109   :  { %608 = vst [vmem:[%s1050_s5 + $0xe0] sm:$0xff] %v698_v40  ;;  %609 = vst [vmem:[%s1050_s5 + $0xe8] sm:$0xff] %v699_v41  ;;  %v273_v46 = vadd.f32 %v272_v42, %v881_v1  ;;  %v386_v47 = vadd.f32 %v385_v43, %v883_v9 }
 0x10b   :  { %v700_v48 = vpack.c.bf16 %v273_v46, %v271_v44  ;;  %v701_v49 = vpack.c.bf16 %v386_v47, %v384_v45 }
 0x10d   :  { %610 = vst [vmem:[%s1050_s5 + $0xf0] sm:$0xff] %v700_v48  ;;  %611 = vst [vmem:[%s1050_s5 + $0xf8] sm:$0xff] %v701_v49 }

// kernel: batch_rnn_forward.3
= control target key start
LH: loop header
LB: loop body
LE: loop exit
PB: predicated region body
PF: predicated region fallthrough
CT: control target
= control target key end

     0   :  { %s1618_s12 = smov 0   ;;  %s1620_s13 = smov 0   ;;  %s2090_s0 = inlined_call_operand.vmem [shape: s32[16,1], index: 0, kind: input, shape index: {}]   ;;  %s2091_s1 = inlined_call_operand.vmem [shape: bf16[8,16,512], index: 1, kind: input, shape index: {}]   ;;  %s2092_s2 = inlined_call_operand.vmem [shape: bf16[128,512], index: 2, kind: input, shape index: {}]   ;;  %s2093_s3 = inlined_call_operand.vmem [shape: f32[8,16,128], index: 3, kind: output, shape index: {}]  }
   0x1   :  { %s1622_s14 = smov 0  }
   0x2 LB: > { %s22_s15 = sadd.s32 1, %s1590_s13  ;;  %p1281_p0 = scmp.ge.s32.totalorder %s1594_s14, 1  ;;  %s1594_s14 = sphi %s1622_s14, %s13_s14   ;;  %s1590_s13 = sphi %s1620_s13, %s2095_s13   ;;  %s1586_s12 = sphi %s1618_s12, %s2094_s12  }
   0x3   : > { %p23_p1 = scmp.ge.s32.totalorder %s22_s15, 2  ;;  %p172_p2 = scmp.lt.s32.totalorder %s1594_s14, 3 }
   0x5   : > { %s2097_s15 = smov (%p23_p1, %s22_s15), 0  ;;  %p173_p3 = pnand %p1281_p0, %p172_p2 }
   0x6   : > { %s1636_s16 = sshll.u32 (!%p173_p3), %s1586_s12, 2  ;;  %p1288_p5 = scmp.ne.s32.totalorder (!%p173_p3), %s1586_s12, 0 }
   0x7   : > { %176 = sbr.rel (%p173_p3) target bundleno = 1078 (0x436), region = 32  ;;  %p220_p4 = scmp.lt.s32.totalorder (!%p173_p3), %s1636_s16, 7 }
   0xc   : > { %s221_s17 = scalar_select %p220_p4, %s1636_s16, 7 }
   0xd   : > { %247 = sbr.rel (%p1288_p5) target bundleno = 21 (0x15), region = 36 }
   0xe   : > { %s1366_s18 = sshll.u32 %s221_s17, 5  ;;  %s1367_s19 = sshll.u32 %s221_s17, 4 }
   0xf   : > { %s1643_s22 = scalar_lea.vmem %s2091_s1, %s1366_s18  ;;  %s1648_s25 = scalar_lea.vmem %s2093_s3, %s1367_s19 }
  0x12   : > { %v1596_v0 = vmov 0.0  }
  0x13   : > { %248 = vst [vmem:[#allocation2] sm:$0xff] %v1596_v0  ;;  %249 = vst [vmem:[#allocation2 + $0x8] sm:$0xff] %v1596_v0 }
  0x14   : > { %250 = vst [vmem:[#allocation3 + $0x8] sm:$0xff] %v1596_v0  ;;  %251 = vst [vmem:[#allocation3] sm:$0xff] %v1596_v0 }
  0x15 PF: > { %v1653_v1 = vld [vmem:[%s2092_s2 + $0xe4] ss:$16 sps:$4 sm:$0xff]   ;;  %v1658_v2 = vld [vmem:[%s2092_s2 + $0xe0] ss:$16 sps:$4 sm:$0xff]   ;;  %v1597_v3 = vmov 0   ;;  %v606_v25 = vstv %s1636_s16  ;;  %s962_s5 = sadd.s32 2, %s1636_s16 }
  0x16   : > { %496 = vmatprep.mubr.bf16.mxu0 %v1597_v3  ;;  %539 = vmatprep.mubr.bf16.mxu1 %v1597_v3  ;;  %v1666_v4 = vld [vmem:[%s2092_s2 + $0xc4] ss:$16 sps:$4 sm:$0xff]   ;;  %v1673_v5 = vld [vmem:[%s2092_s2 + $0xc0] ss:$16 sps:$4 sm:$0xff]   ;;  %v1685_v7 = vld [vmem:[%s2092_s2 + $0xec] ss:$16 sps:$4 sm:$0xff]   ;;  %v1827_v33 = vstv %s962_s5 }
  0x17   : > { %464 = vmatprep.subr.bf16.mxu0 %v1653_v1  ;;  %1394 = vset.pattern.permute.xlu0 %v1597_v3  ;;  %v1680_v6 = vld [vmem:[%s2092_s2 + $0xa4] ss:$16 sps:$4 sm:$0xff]   ;;  %v1690_v8 = vld [vmem:[%s2092_s2 + $0xe8] ss:$16 sps:$4 sm:$0xff]   ;;  %v1696_v9 = vld [vmem:[%s2092_s2 + $0xa0] ss:$16 sps:$4 sm:$0xff]  }
  0x18   : > { %465 = vmatpush1.bf16.msra.mxu0 %v1658_v2  ;;  %1395 = vset.pattern.permute.xlu1 %v1597_v3  ;;  %v1703_v10 = vld [vmem:[%s2092_s2 + $0x84] ss:$16 sps:$4 sm:$0xff]   ;;  %v1709_v11 = vld [vmem:[%s2092_s2 + $0xcc] ss:$16 sps:$4 sm:$0xff]   ;;  %v1714_v12 = vld [vmem:[%s2092_s2 + $0xc8] ss:$16 sps:$4 sm:$0xff]  }
  0x19   : > { %466 = vmatprep.subr.bf16.mxu0 %v1666_v4  ;;  %507 = vmatprep.subr.bf16.mxu1 %v1685_v7  ;;  %v1721_v13 = vld [vmem:[%s2092_s2 + $0x80] ss:$16 sps:$4 sm:$0xff]   ;;  %v1726_v14 = vld [vmem:[%s2092_s2 + $0x64] ss:$16 sps:$4 sm:$0xff]   ;;  %v1731_v15 = vld [vmem:[%s2092_s2 + $0xac] ss:$16 sps:$4 sm:$0xff]  }
  0x1a   : > { %508 = vmatpush1.bf16.msra.mxu1 %v1690_v8  ;;  %v1738_v16 = vld [vmem:[%s2092_s2 + $0xa8] ss:$16 sps:$4 sm:$0xff]   ;;  %v1744_v17 = vld [vmem:[%s2092_s2 + $0x8c] ss:$16 sps:$4 sm:$0xff]   ;;  %v1750_v18 = vld [vmem:[%s2092_s2 + $0x60] ss:$16 sps:$4 sm:$0xff]  }
  0x1b   : > { %509 = vmatprep.subr.bf16.mxu1 %v1709_v11  ;;  %v1756_v19 = vld [vmem:[%s2092_s2 + $0x44] ss:$16 sps:$4 sm:$0xff]   ;;  %v1762_v20 = vld [vmem:[%s2092_s2 + $0x88] ss:$16 sps:$4 sm:$0xff]   ;;  %v1768_v21 = vld [vmem:[%s2092_s2 + $0x6c] ss:$16 sps:$4 sm:$0xff]  }
  0x1c   : > { %467 = vmatpush1.bf16.msra.mxu0 %v1673_v5  ;;  %v1774_v22 = vld [vmem:[%s2092_s2 + $0x40] ss:$16 sps:$4 sm:$0xff]   ;;  %v1780_v23 = vld [vmem:[%s2092_s2 + $0x24] ss:$16 sps:$4 sm:$0xff]   ;;  %v1786_v24 = vld [vmem:[%s2092_s2 + $0x68] ss:$16 sps:$4 sm:$0xff]  }
  0x1d   : > { %468 = vmatprep.subr.bf16.mxu0 %v1680_v6  ;;  %v1793_v26 = vld [vmem:[%s2092_s2 + $0x4c] ss:$16 sps:$4 sm:$0xff]   ;;  %v1799_v27 = vld [vmem:[%s2090_s0] sm:$0xff]  ;;  %v1824_v31 = vld [vmem:[%s2092_s2 + $0x48] ss:$16 sps:$4 sm:$0xff]   ;;  %s1141_s23 = sadd.s32 3, %s1636_s16 }
  0x1e   : > { %510 = vmatpush1.bf16.msra.mxu1 %v1714_v12  ;;  %v1804_v28 = vld [vmem:[%s2090_s0 + $0x8] sm:$0xff]  ;;  %v1810_v29 = vld [vmem:[%s2092_s2 + $0x20] ss:$16 sps:$4 sm:$0xff]   ;;  %vm607_vm0 = vcmp.lt.s32.totalorder %v606_v25, %v1799_v27  ;;  %v1818_v30 = vld [vmem:[%s2092_s2 + $0x4] ss:$16 sps:$4 sm:$0xff]   ;;  %vm964_vm2 = vcmp.lt.s32.totalorder %v1827_v33, %v1799_v27  ;;  %v1856_v40 = vstv %s1141_s23  ;;  %s783_s6 = sadd.s32 1, %s1636_s16 }
  0x1f   : > { %511 = vmatprep.subr.bf16.mxu1 %v1731_v15  ;;  %vm608_vm1 = vcmp.lt.s32.totalorder %v606_v25, %v1804_v28  ;;  %v609_v32 = vsel %vm607_vm0, 1, %v1597_v3  ;;  %v1833_v34 = vld [vmem:[%s2092_s2 + $0x2c] ss:$16 sps:$4 sm:$0xff]   ;;  %v1841_v36 = vld [vmem:[%s2092_s2] ss:$16 sps:$4 sm:$0xff]   ;;  %v966_v43 = vsel %vm964_vm2, 1, %v1597_v3  ;;  %vm1143_vm3 = vcmp.lt.s32.totalorder %v1856_v40, %v1799_v27 }
  0x20   : > { %469 = vmatpush1.bf16.msra.mxu0 %v1696_v9  ;;  %612 = vperm.xlu0 %1394, %v609_v32   ;;  %v610_v35 = vsel %vm608_vm1, 1, %v1597_v3  ;;  %v1843_v37 = vld [vmem:[#allocation2] sm:$0xff]  ;;  %v1845_v38 = vld [vmem:[#allocation2 + $0x8] sm:$0xff]  ;;  %v1145_v45 = vsel %vm1143_vm3, 1, %v1597_v3  ;;  %v784_v46 = vstv %s783_s6  ;;  %vm965_vm6 = vcmp.lt.s32.totalorder %v1827_v33, %v1804_v28  ;;  %v293_v53 = vld [vmem:[%s1643_s22 + $0x10] sm:$0xff] }
  0x21   : > { %470 = vmatprep.subr.bf16.mxu0 %v1703_v10  ;;  %v1854_v39 = vld [vmem:[%s2092_s2 + $0x28] ss:$16 sps:$4 sm:$0xff]   ;;  %v1862_v41 = vld [vmem:[%s2092_s2 + $0xc] ss:$16 sps:$4 sm:$0xff]   ;;  %v303_v42 = vpack.c.bf16 %v1845_v38, %v1843_v37  ;;  %vm785_vm4 = vcmp.lt.s32.totalorder %v784_v46, %v1799_v27  ;;  %vm786_vm5 = vcmp.lt.s32.totalorder %v784_v46, %v1804_v28  ;;  %v967_v49 = vsel %vm965_vm6, 1, %v1597_v3  ;;  %v291_v51 = vld [vmem:[%s1643_s22] sm:$0xff] }
  0x22   : > { %512 = vmatpush1.bf16.msra.mxu1 %v1738_v16  ;;  %v1874_v44 = vld [vmem:[%s2092_s2 + $0x8] ss:$16 sps:$4 sm:$0xff]   ;;  %v787_v47 = vsel %vm785_vm4, 1, %v1597_v3  ;;  %v788_v48 = vsel %vm786_vm5, 1, %v1597_v3  ;;  %vm1144_vm7 = vcmp.lt.s32.totalorder %v1856_v40, %v1804_v28  ;;  %v295_v52 = vunpack.c.l.bf16 %v291_v51 }
  0x23   : > { %513 = vmatprep.subr.bf16.mxu1 %v1744_v17  ;;  %790 = vperm.xlu1 %1395, %v787_v47   ;;  %v1146_v50 = vsel %vm1144_vm7, 1, %v1597_v3  ;;  %v296_v54 = vunpack.c.h.bf16 %v291_v51  ;;  %v299_v57 = vunpack.c.l.bf16 %v293_v53  ;;  %v300_v61 = vunpack.c.h.bf16 %v293_v53  ;;  %v292_v63 = vld [vmem:[%s1643_s22 + $0x8] sm:$0xff] }
  0x24   : > { %471 = vmatpush1.bf16.msra.mxu0 %v1721_v13  ;;  %615 = vperm.xlu0 %1394, %v610_v35   ;;  %v297_v33 = vunpack.c.l.bf16 %v292_v63  ;;  %v298_v46 = vunpack.c.h.bf16 %v292_v63 }
  0x25   : > { %472 = vmatprep.subr.bf16.mxu0 %v1726_v14 }
  0x26   : > { %514 = vmatpush1.bf16.msra.mxu1 %v1762_v20 }
  0x27   : > { %515 = vmatprep.subr.bf16.mxu1 %v1768_v21  ;;  %793 = vperm.xlu1 %1395, %v788_v48  }
  0x28   : > { %473 = vmatpush1.bf16.msra.mxu0 %v1750_v18  ;;  %969 = vperm.xlu0 %1394, %v966_v43  }
  0x29   : > { %474 = vmatprep.subr.bf16.mxu0 %v1756_v19 }
  0x2a   : > { %516 = vmatpush1.bf16.msra.mxu1 %v1786_v24 }
  0x2b   : > { %517 = vmatprep.subr.bf16.mxu1 %v1793_v26  ;;  %972 = vperm.xlu1 %1395, %v967_v49  }
  0x2c   : > { %475 = vmatpush1.bf16.msra.mxu0 %v1774_v22  ;;  %1148 = vperm.xlu0 %1394, %v1145_v45  }
  0x2d   : > { %476 = vmatprep.subr.bf16.mxu0 %v1780_v23 }
  0x2e   : > { %518 = vmatpush1.bf16.msra.mxu1 %v1824_v31 }
  0x2f   : > { %519 = vmatprep.subr.bf16.mxu1 %v1833_v34  ;;  %1151 = vperm.xlu1 %1395, %v1146_v50  }
  0x30   : > { %477 = vmatpush1.bf16.msra.mxu0 %v1810_v29 }
  0x31   : > { %478 = vmatprep.subr.bf16.mxu0 %v1818_v30 }
  0x32   : > { %520 = vmatpush1.bf16.msra.mxu1 %v1854_v39 }
  0x33   : > { %521 = vmatprep.subr.bf16.mxu1 %v1862_v41 }
  0x34   : > { %479 = vmatpush1.bf16.msra.mxu0 %v1841_v36 }
  0x35   : > { %641 = vmatprep.subr.bf16.mxu0 %v1653_v1 }
  0x36   : > { %522 = vmatpush1.bf16.msra.mxu1 %v1874_v44 }
  0x37   : > { %497 = vmatmul.mubr.bf16.vlgmr.msra.gmra.mxu0 %v303_v42  ;;  %684 = vmatprep.subr.bf16.mxu1 %v1685_v7 }
  0x38   : > { %642 = vmatpush1.bf16.msra.mxu0 %v1658_v2  ;;  %673 = vmatprep.mubr.bf16.mxu0 %v1597_v3 }
  0x39   : > { %643 = vmatprep.subr.bf16.mxu0 %v1666_v4  ;;  %540 = vmatmul.mubr.bf16.vlgmr.msra.gmra.mxu1 %v303_v42  ;;  %v294_v42 = vld [vmem:[%s1643_s22 + $0x18] sm:$0xff] }
  0x3a   : > { %685 = vmatpush1.bf16.msra.mxu1 %v1690_v8  ;;  %716 = vmatprep.mubr.bf16.mxu1 %v1597_v3  ;;  %v301_v47 = vunpack.c.l.bf16 %v294_v42  ;;  %v302_v53 = vunpack.c.h.bf16 %v294_v42 }
  0x3b   : > { %686 = vmatprep.subr.bf16.mxu1 %v1709_v11 }
  0x3c   : > { %644 = vmatpush1.bf16.msra.mxu0 %v1673_v5 }
  0x3d   : > { %645 = vmatprep.subr.bf16.mxu0 %v1680_v6 }
  0x3e   : > { %687 = vmatpush1.bf16.msra.mxu1 %v1714_v12 }
  0x3f   : > { %688 = vmatprep.subr.bf16.mxu1 %v1731_v15 }
  0x40   : > { %646 = vmatpush1.bf16.msra.mxu0 %v1696_v9 }
  0x41   : > { %647 = vmatprep.subr.bf16.mxu0 %v1703_v10 }
  0x42   : > { %689 = vmatpush1.bf16.msra.mxu1 %v1738_v16 }
  0x43   : > { %690 = vmatprep.subr.bf16.mxu1 %v1744_v17 }
  0x44   : > { %648 = vmatpush1.bf16.msra.mxu0 %v1721_v13 }
  0x45   : > { %649 = vmatprep.subr.bf16.mxu0 %v1726_v14 }
  0x46   : > { %691 = vmatpush1.bf16.msra.mxu1 %v1762_v20 }
  0x47   : > { %692 = vmatprep.subr.bf16.mxu1 %v1768_v21 }
  0x48   : > { %650 = vmatpush1.bf16.msra.mxu0 %v1750_v18 }
  0x49   : > { %651 = vmatprep.subr.bf16.mxu0 %v1756_v19 }
  0x4a   : > { %693 = vmatpush1.bf16.msra.mxu1 %v1786_v24 }
  0x4b   : > { %694 = vmatprep.subr.bf16.mxu1 %v1793_v26 }
  0x4c   : > { %652 = vmatpush1.bf16.msra.mxu0 %v1774_v22 }
  0x4d   : > { %653 = vmatprep.subr.bf16.mxu0 %v1780_v23 }
  0x4e   : > { %695 = vmatpush1.bf16.msra.mxu1 %v1824_v31 }
  0x4f   : > { %696 = vmatprep.subr.bf16.mxu1 %v1833_v34 }
  0x50   : > { %654 = vmatpush1.bf16.msra.mxu0 %v1810_v29 }
  0x51   : > { %655 = vmatprep.subr.bf16.mxu0 %v1818_v30 }
  0x52   : > { %697 = vmatpush1.bf16.msra.mxu1 %v1854_v39 }
  0x53   : > { %698 = vmatprep.subr.bf16.mxu1 %v1862_v41 }
  0x54   : > { %656 = vmatpush1.bf16.msra.mxu0 %v1841_v36 }
  0x55   : > { %820 = vmatprep.subr.bf16.mxu0 %v1653_v1 }
  0x56   : > { %699 = vmatpush1.bf16.msra.mxu1 %v1874_v44 }
  0x57   : > { %863 = vmatprep.subr.bf16.mxu1 %v1685_v7 }
  0xf7   : > { %v498_v55 = vpop.f32.mrf.mxu0 }
  0xf8   : > { %v550_v56 = vadd.f32 %v498_v55, %v295_v52 }
  0xf9   : > { %v500_v58 = vpop.f32.mrf.mxu0  ;;  %v541_v35 = vpop.f32.mrf.mxu1 }
  0xfa   : > { %v1322_v59 = vmul.f32 -1.442695, %v550_v56  ;;  %v551_v60 = vadd.f32 %v500_v58, %v296_v54  ;;  %v552_v43 = vadd.f32 %v541_v35, %v297_v33 }
  0xfb   : > { %v502_v62 = vpop.f32.mrf.mxu0  ;;  %v543_v45 = vpop.f32.mrf.mxu1 }
  0xfc   : > { %1444 = vpow2.f32 %v1322_v59  ;;  %v1323_v0 = vmul.f32 -1.442695, %v551_v60  ;;  %v554_v25 = vadd.f32 %v502_v62, %v299_v57  ;;  %v1324_v48 = vmul.f32 -1.442695, %v552_v43 }
  0xfd   : > { %v504_v27 = vpop.f32.mrf.mxu0  ;;  %v545_v49 = vpop.f32.mrf.mxu1  ;;  %v553_v50 = vadd.f32 %v543_v45, %v298_v46  ;;  %v290_v46 = vld [vmem:[#allocation3] sm:$0xff] }
  0xfe   : > { %1446 = vpow2.f32 %v1323_v0  ;;  %v1325_v28 = vmul.f32 -1.442695, %v554_v25  ;;  %v555_v32 = vadd.f32 %v504_v27, %v300_v61  ;;  %v556_v51 = vadd.f32 %v545_v49, %v301_v47  ;;  %v613_v27 = vpop.permute.xlu0 %612 }
  0xff   : > { %v547_v55 = vpop.f32.mrf.mxu1  ;;  %vm617_vm8 = vcmp.eq.s32.totalorder %v613_v27, 1  ;;  %v1330_v27 = vld [vmem:[%s1643_s22 + $0x30] sm:$0xff] }
 0x100   : > { %1448 = vpow2.f32 %v1325_v28  ;;  %v1326_v40 = vmul.f32 -1.442695, %v555_v32  ;;  %v1327_v57 = vmul.f32 -1.442695, %v556_v51  ;;  %v557_v60 = vadd.f32 %v547_v55, %v302_v53  ;;  %v289_v32 = vld [vmem:[#allocation3 + $0x8] sm:$0xff] }
 0x102   : > { %1450 = vpow2.f32 %v1326_v40  ;;  %v616_v49 = vpop.permute.xlu0 %615 }
 0x103   : > { %1452 = vpow2.f32 %v1324_v48  ;;  %vm618_vm9 = vcmp.eq.s32.totalorder %v616_v49, 1  ;;  %v1329_v49 = vld [vmem:[%s1643_s22 + $0x28] sm:$0xff] }
 0x104   : > { %1454 = vtanh.f32 %v553_v50 }
 0x109   : > { %v1445_v52 = vpop.eup %1444 }
 0x10a   : > { %v576_v54 = vadd.f32 1.0, %v1445_v52 }
 0x10b   : > { %v1447_v56 = vpop.eup %1446 }
 0x10c   : > { %1456 = vrcp.f32 %v576_v54  ;;  %v577_v58 = vadd.f32 1.0, %v1447_v56 }
 0x10d   : > { %v1449_v59 = vpop.eup %1448 }
 0x10e   : > { %1458 = vrcp.f32 %v577_v58  ;;  %v579_v61 = vadd.f32 1.0, %v1449_v59 }
 0x10f   : > { %v1451_v62 = vpop.eup %1450  ;;  %1460 = vpow2.f32 %v1327_v57 }
 0x110   : > { %1462 = vrcp.f32 %v579_v61  ;;  %v580_v63 = vadd.f32 1.0, %v1451_v62  ;;  %v1453_v0 = vpop.eup %1452 }
 0x111   : > { %1464 = vtanh.f32 %v557_v60  ;;  %v1455_v25 = vpop.eup %1454  ;;  %v578_v35 = vadd.f32 1.0, %v1453_v0 }
 0x112   : > { %1466 = vrcp.f32 %v580_v63 }
 0x113   : > { %1468 = vrcp.f32 %v578_v35 }
 0x119   : > { %v1457_v28 = vpop.eup %1456 }
 0x11a   : > { %v598_v43 = vmul.f32 %v1457_v28, %v1455_v25 }
 0x11b   : > { %v1459_v33 = vpop.eup %1458 }
 0x11c   : > { %v1461_v40 = vpop.eup %1460  ;;  %v596_v42 = vmul.f32 %v1459_v33, %v289_v32 }
 0x11d   : > { %v1463_v45 = vpop.eup %1462  ;;  %v581_v51 = vadd.f32 1.0, %v1461_v40 }
 0x11e   : > { %v1465_v47 = vpop.eup %1464  ;;  %v600_v48 = vadd.f32 %v598_v43, %v596_v42  ;;  %v636_v42 = vunpack.c.l.bf16 %v1330_v27 }
 0x11f   : > { %v1467_v50 = vpop.eup %1466  ;;  %v599_v54 = vmul.f32 %v1465_v47, %v1463_v45  ;;  %v637_v47 = vunpack.c.h.bf16 %v1330_v27 }
 0x120   : > { %1470 = vtanh.f32 %v600_v48  ;;  %v1931_v52 = vsel %vm617_vm8, %v600_v48, %v289_v32  ;;  %v597_v53 = vmul.f32 %v1467_v50, %v290_v46  ;;  %v1469_v57 = vpop.eup %1468 }
 0x121   : > { %1472 = vrcp.f32 %v581_v51 }
 0x122   : > { %v601_v55 = vadd.f32 %v599_v54, %v597_v53 }
 0x124   : > { %1474 = vtanh.f32 %v601_v55  ;;  %v1933_v56 = vsel %vm618_vm9, %v601_v55, %v290_v46  ;;  %v634_v55 = vunpack.c.l.bf16 %v1329_v49 }
 0x12d   : > { %v1471_v58 = vpop.eup %1470 }
 0x12e   : > { %v604_v59 = vmul.f32 %v1471_v58, %v1469_v57  ;;  %v1473_v60 = vpop.eup %1472  ;;  %v1331_v58 = vld [vmem:[%s1643_s22 + $0x38] sm:$0xff] }
 0x12f   : > { %v639_v27 = vunpack.c.h.bf16 %v1331_v58 }
 0x130   : > { %v623_v61 = vsel %vm617_vm8, %v604_v59, 0.0  ;;  %v1939_v0 = vsel %vm617_vm8, %v604_v59, %v1843_v37  ;;  %v1328_v37 = vld [vmem:[%s1643_s22 + $0x20] sm:$0xff] }
 0x131   : > { %v1475_v62 = vpop.eup %1474  ;;  %625 = vst [vmem:[%s1648_s25] sm:$0xff] %v623_v61  ;;  %v633_v33 = vunpack.c.h.bf16 %v1328_v37  ;;  %v638_v61 = vunpack.c.l.bf16 %v1331_v58 }
 0x132   : > { %v605_v63 = vmul.f32 %v1475_v62, %v1473_v60 }
 0x134   : > { %v1942_v25 = vsel %vm618_vm9, %v605_v63, %v1845_v38  ;;  %v624_v28 = vsel %vm618_vm9, %v605_v63, 0.0  ;;  %v632_v38 = vunpack.c.l.bf16 %v1328_v37  ;;  %v635_v63 = vunpack.c.h.bf16 %v1329_v49 }
 0x135   : > { %626 = vst [vmem:[%s1648_s25 + $0x8] sm:$0xff] %v624_v28  ;;  %v640_v32 = vpack.c.bf16 %v1942_v25, %v1939_v0 }
 0x137   : > { %674 = vmatmul.mubr.bf16.vlgmr.msra.gmra.mxu0 %v640_v32  ;;  %717 = vmatmul.mubr.bf16.vlgmr.msra.gmra.mxu1 %v640_v32 }
 0x138   : > { %821 = vmatpush1.bf16.msra.mxu0 %v1658_v2  ;;  %864 = vmatpush1.bf16.msra.mxu1 %v1690_v8 }
 0x139   : > { %822 = vmatprep.subr.bf16.mxu0 %v1666_v4  ;;  %865 = vmatprep.subr.bf16.mxu1 %v1709_v11 }
 0x13a   : > { %852 = vmatprep.mubr.bf16.mxu0 %v1597_v3  ;;  %895 = vmatprep.mubr.bf16.mxu1 %v1597_v3 }
 0x13c   : > { %823 = vmatpush1.bf16.msra.mxu0 %v1673_v5  ;;  %866 = vmatpush1.bf16.msra.mxu1 %v1714_v12 }
 0x13d   : > { %824 = vmatprep.subr.bf16.mxu0 %v1680_v6  ;;  %867 = vmatprep.subr.bf16.mxu1 %v1731_v15 }
 0x140   : > { %825 = vmatpush1.bf16.msra.mxu0 %v1696_v9  ;;  %868 = vmatpush1.bf16.msra.mxu1 %v1738_v16 }
 0x141   : > { %826 = vmatprep.subr.bf16.mxu0 %v1703_v10  ;;  %869 = vmatprep.subr.bf16.mxu1 %v1744_v17 }
 0x144   : > { %827 = vmatpush1.bf16.msra.mxu0 %v1721_v13  ;;  %870 = vmatpush1.bf16.msra.mxu1 %v1762_v20 }
 0x145   : > { %828 = vmatprep.subr.bf16.mxu0 %v1726_v14  ;;  %871 = vmatprep.subr.bf16.mxu1 %v1768_v21 }
 0x148   : > { %829 = vmatpush1.bf16.msra.mxu0 %v1750_v18  ;;  %872 = vmatpush1.bf16.msra.mxu1 %v1786_v24 }
 0x149   : > { %830 = vmatprep.subr.bf16.mxu0 %v1756_v19  ;;  %873 = vmatprep.subr.bf16.mxu1 %v1793_v26 }
 0x14c   : > { %831 = vmatpush1.bf16.msra.mxu0 %v1774_v22  ;;  %874 = vmatpush1.bf16.msra.mxu1 %v1824_v31 }
 0x14d   : > { %832 = vmatprep.subr.bf16.mxu0 %v1780_v23  ;;  %875 = vmatprep.subr.bf16.mxu1 %v1833_v34 }
 0x150   : > { %833 = vmatpush1.bf16.msra.mxu0 %v1810_v29  ;;  %876 = vmatpush1.bf16.msra.mxu1 %v1854_v39 }
 0x151   : > { %834 = vmatprep.subr.bf16.mxu0 %v1818_v30  ;;  %877 = vmatprep.subr.bf16.mxu1 %v1862_v41 }
 0x154   : > { %835 = vmatpush1.bf16.msra.mxu0 %v1841_v36  ;;  %878 = vmatpush1.bf16.msra.mxu1 %v1874_v44 }
 0x155   : > { %999 = vmatprep.subr.bf16.mxu0 %v1653_v1  ;;  %1042 = vmatprep.subr.bf16.mxu1 %v1685_v7 }
 0x1f7   : > { %v675_v35 = vpop.f32.mrf.mxu0  ;;  %v718_v50 = vpop.f32.mrf.mxu1 }
 0x1f8   : > { %v727_v40 = vadd.f32 %v675_v35, %v632_v38  ;;  %v729_v60 = vadd.f32 %v718_v50, %v634_v55 }
 0x1f9   : > { %v677_v43 = vpop.f32.mrf.mxu0  ;;  %v720_v57 = vpop.f32.mrf.mxu1 }
 0x1fa   : > { %v1332_v45 = vmul.f32 -1.442695, %v727_v40  ;;  %v728_v46 = vadd.f32 %v677_v43, %v633_v33  ;;  %v1334_v28 = vmul.f32 -1.442695, %v729_v60  ;;  %v730_v38 = vadd.f32 %v720_v57, %v635_v63 }
 0x1fb   : > { %v679_v48 = vpop.f32.mrf.mxu0  ;;  %v722_v62 = vpop.f32.mrf.mxu1 }
 0x1fc   : > { %1476 = vpow2.f32 %v1332_v45  ;;  %v1333_v51 = vmul.f32 -1.442695, %v728_v46  ;;  %v731_v1 = vadd.f32 %v679_v48, %v636_v42  ;;  %v733_v32 = vadd.f32 %v722_v62, %v638_v61 }
 0x1fd   : > { %v681_v53 = vpop.f32.mrf.mxu0  ;;  %v724_v35 = vpop.f32.mrf.mxu1 }
 0x1fe   : > { %1478 = vpow2.f32 %v1333_v51  ;;  %v1335_v7 = vmul.f32 -1.442695, %v731_v1  ;;  %v732_v54 = vadd.f32 %v681_v53, %v637_v47  ;;  %v1337_v42 = vmul.f32 -1.442695, %v733_v32  ;;  %v791_v51 = vpop.permute.xlu1 %790 }
 0x1ff   : > { %v734_v46 = vadd.f32 %v724_v35, %v639_v27  ;;  %vm795_vm10 = vcmp.eq.s32.totalorder %v791_v51, 1 }
 0x200   : > { %1480 = vpow2.f32 %v1335_v7  ;;  %v1336_v59 = vmul.f32 -1.442695, %v732_v54 }
 0x202   : > { %1482 = vpow2.f32 %v1336_v59  ;;  %v794_v62 = vpop.permute.xlu1 %793 }
 0x203   : > { %1484 = vpow2.f32 %v1334_v28  ;;  %vm796_vm11 = vcmp.eq.s32.totalorder %v794_v62, 1 }
 0x209   : > { %v1477_v37 = vpop.eup %1476 }
 0x20a   : > { %v753_v33 = vadd.f32 1.0, %v1477_v37 }
 0x20b   : > { %v1479_v40 = vpop.eup %1478 }
 0x20c   : > { %1486 = vrcp.f32 %v753_v33  ;;  %v754_v43 = vadd.f32 1.0, %v1479_v40 }
 0x20d   : > { %v1481_v45 = vpop.eup %1480  ;;  %1488 = vtanh.f32 %v730_v38 }
 0x20e   : > { %1490 = vrcp.f32 %v754_v43  ;;  %v756_v47 = vadd.f32 1.0, %v1481_v45 }
 0x20f   : > { %v1483_v48 = vpop.eup %1482  ;;  %1492 = vpow2.f32 %v1337_v42 }
 0x210   : > { %1494 = vrcp.f32 %v756_v47  ;;  %v757_v49 = vadd.f32 1.0, %v1483_v48  ;;  %v1485_v50 = vpop.eup %1484 }
 0x211   : > { %1496 = vtanh.f32 %v734_v46  ;;  %v755_v54 = vadd.f32 1.0, %v1485_v50 }
 0x212   : > { %1498 = vrcp.f32 %v757_v49 }
 0x213   : > { %1500 = vrcp.f32 %v755_v54 }
 0x219   : > { %v1487_v1 = vpop.eup %1486 }
 0x21a   : > { %v1489_v53 = vpop.eup %1488 }
 0x21b   : > { %v1491_v7 = vpop.eup %1490  ;;  %v775_v58 = vmul.f32 %v1489_v53, %v1487_v1 }
 0x21c   : > { %v1493_v55 = vpop.eup %1492  ;;  %v773_v57 = vmul.f32 %v1491_v7, %v1931_v52 }
 0x21d   : > { %v1495_v59 = vpop.eup %1494  ;;  %v758_v28 = vadd.f32 1.0, %v1493_v55 }
 0x21e   : > { %v1497_v60 = vpop.eup %1496  ;;  %v777_v61 = vadd.f32 %v775_v58, %v773_v57 }
 0x21f   : > { %v1499_v63 = vpop.eup %1498  ;;  %v776_v38 = vmul.f32 %v1497_v60, %v1495_v59 }
 0x220   : > { %1502 = vtanh.f32 %v777_v61  ;;  %v1988_v32 = vsel %vm795_vm10, %v777_v61, %v1931_v52  ;;  %v774_v37 = vmul.f32 %v1499_v63, %v1933_v56  ;;  %v1501_v35 = vpop.eup %1500 }
 0x221   : > { %1504 = vrcp.f32 %v758_v28 }
 0x222   : > { %v778_v27 = vadd.f32 %v776_v38, %v774_v37 }
 0x224   : > { %1506 = vtanh.f32 %v778_v27  ;;  %v1992_v33 = vsel %vm796_vm11, %v778_v27, %v1933_v56 }
 0x22d   : > { %v1503_v40 = vpop.eup %1502 }
 0x22e   : > { %v781_v42 = vmul.f32 %v1503_v40, %v1501_v35  ;;  %v1505_v43 = vpop.eup %1504  ;;  %v970_v40 = vpop.permute.xlu0 %969 }
 0x22f   : > { %vm974_vm12 = vcmp.eq.s32.totalorder %v970_v40, 1 }
 0x230   : > { %v801_v45 = vsel %vm795_vm10, %v781_v42, 0.0  ;;  %v1998_v47 = vsel %vm795_vm10, %v781_v42, %v1939_v0 }
 0x231   : > { %v1507_v46 = vpop.eup %1506  ;;  %1338 = vst [vmem:[%s1648_s25 + $0x10] sm:$0xff] %v801_v45 }
 0x232   : > { %v782_v52 = vmul.f32 %v1507_v46, %v1505_v43 }
 0x234   : > { %v2001_v48 = vsel %vm796_vm11, %v782_v52, %v1942_v25  ;;  %v802_v49 = vsel %vm796_vm11, %v782_v52, 0.0 }
 0x235   : > { %1339 = vst [vmem:[%s1648_s25 + $0x18] sm:$0xff] %v802_v49  ;;  %v819_v56 = vpack.c.bf16 %v2001_v48, %v1998_v47 }
 0x237   : > { %853 = vmatmul.mubr.bf16.vlgmr.msra.gmra.mxu0 %v819_v56  ;;  %896 = vmatmul.mubr.bf16.vlgmr.msra.gmra.mxu1 %v819_v56  ;;  %v973_v56 = vpop.permute.xlu1 %972 }
 0x238   : > { %1000 = vmatpush1.bf16.msra.mxu0 %v1658_v2  ;;  %1043 = vmatpush1.bf16.msra.mxu1 %v1690_v8  ;;  %v1340_v2 = vld [vmem:[%s1643_s22 + $0x40] sm:$0xff]  ;;  %vm975_vm13 = vcmp.eq.s32.totalorder %v973_v56, 1 }
 0x239   : > { %1001 = vmatprep.subr.bf16.mxu0 %v1666_v4  ;;  %1044 = vmatprep.subr.bf16.mxu1 %v1709_v11  ;;  %v1342_v4 = vld [vmem:[%s1643_s22 + $0x50] sm:$0xff] }
 0x23a   : > { %1031 = vmatprep.mubr.bf16.mxu0 %v1597_v3  ;;  %1074 = vmatprep.mubr.bf16.mxu1 %v1597_v3  ;;  %v811_v3 = vunpack.c.l.bf16 %v1340_v2 }
 0x23c   : > { %1002 = vmatpush1.bf16.msra.mxu0 %v1673_v5  ;;  %1045 = vmatpush1.bf16.msra.mxu1 %v1714_v12  ;;  %v812_v5 = vunpack.c.h.bf16 %v1340_v2 }
 0x23d   : > { %1003 = vmatprep.subr.bf16.mxu0 %v1680_v6  ;;  %1046 = vmatprep.subr.bf16.mxu1 %v1731_v15  ;;  %v1341_v15 = vld [vmem:[%s1643_s22 + $0x48] sm:$0xff] }
 0x240   : > { %1004 = vmatpush1.bf16.msra.mxu0 %v1696_v9  ;;  %1047 = vmatpush1.bf16.msra.mxu1 %v1738_v16  ;;  %v815_v9 = vunpack.c.l.bf16 %v1342_v4 }
 0x241   : > { %1005 = vmatprep.subr.bf16.mxu0 %v1703_v10  ;;  %1048 = vmatprep.subr.bf16.mxu1 %v1744_v17 }
 0x244   : > { %1006 = vmatpush1.bf16.msra.mxu0 %v1721_v13  ;;  %1049 = vmatpush1.bf16.msra.mxu1 %v1762_v20  ;;  %v816_v13 = vunpack.c.h.bf16 %v1342_v4 }
 0x245   : > { %1007 = vmatprep.subr.bf16.mxu0 %v1726_v14  ;;  %1050 = vmatprep.subr.bf16.mxu1 %v1768_v21 }
 0x248   : > { %1008 = vmatpush1.bf16.msra.mxu0 %v1750_v18  ;;  %1051 = vmatpush1.bf16.msra.mxu1 %v1786_v24  ;;  %v1343_v24 = vld [vmem:[%s1643_s22 + $0x58] sm:$0xff] }
 0x249   : > { %1009 = vmatprep.subr.bf16.mxu0 %v1756_v19  ;;  %1052 = vmatprep.subr.bf16.mxu1 %v1793_v26  ;;  %v818_v0 = vunpack.c.h.bf16 %v1343_v24 }
 0x24c   : > { %1010 = vmatpush1.bf16.msra.mxu0 %v1774_v22  ;;  %1053 = vmatpush1.bf16.msra.mxu1 %v1824_v31  ;;  %v813_v22 = vunpack.c.l.bf16 %v1341_v15 }
 0x24d   : > { %1011 = vmatprep.subr.bf16.mxu0 %v1780_v23  ;;  %1054 = vmatprep.subr.bf16.mxu1 %v1833_v34  ;;  %v814_v34 = vunpack.c.h.bf16 %v1341_v15 }
 0x250   : > { %1012 = vmatpush1.bf16.msra.mxu0 %v1810_v29  ;;  %1055 = vmatpush1.bf16.msra.mxu1 %v1854_v39 }
 0x251   : > { %1013 = vmatprep.subr.bf16.mxu0 %v1818_v30  ;;  %1056 = vmatprep.subr.bf16.mxu1 %v1862_v41  ;;  %v817_v30 = vunpack.c.l.bf16 %v1343_v24  ;;  %v1353_v24 = vld [vmem:[%s1643_s22 + $0x68] sm:$0xff] }
 0x254   : > { %1014 = vmatpush1.bf16.msra.mxu0 %v1841_v36  ;;  %1057 = vmatpush1.bf16.msra.mxu1 %v1874_v44 }
 0x2f7   : > { %v854_v6 = vpop.f32.mrf.mxu0  ;;  %v897_v16 = vpop.f32.mrf.mxu1 }
 0x2f8   : > { %v906_v8 = vadd.f32 %v854_v6, %v811_v3  ;;  %v908_v29 = vadd.f32 %v897_v16, %v813_v22  ;;  %v1354_v16 = vld [vmem:[%s1643_s22 + $0x70] sm:$0xff] }
 0x2f9   : > { %v856_v10 = vpop.f32.mrf.mxu0  ;;  %v899_v23 = vpop.f32.mrf.mxu1  ;;  %v995_v22 = vunpack.c.h.bf16 %v1354_v16 }
 0x2fa   : > { %v1344_v11 = vmul.f32 -1.442695, %v906_v8  ;;  %v907_v12 = vadd.f32 %v856_v10, %v812_v5  ;;  %v1346_v36 = vmul.f32 -1.442695, %v908_v29  ;;  %v909_v44 = vadd.f32 %v899_v23, %v814_v34 }
 0x2fb   : > { %v858_v14 = vpop.f32.mrf.mxu0  ;;  %v901_v31 = vpop.f32.mrf.mxu1 }
 0x2fc   : > { %1508 = vpow2.f32 %v1344_v11  ;;  %v1345_v17 = vmul.f32 -1.442695, %v907_v12  ;;  %v910_v18 = vadd.f32 %v858_v14, %v815_v9  ;;  %v912_v39 = vadd.f32 %v901_v31, %v817_v30  ;;  %v1352_v14 = vld [vmem:[%s1643_s22 + $0x60] sm:$0xff] }
 0x2fd   : > { %v860_v19 = vpop.f32.mrf.mxu0  ;;  %v903_v50 = vpop.f32.mrf.mxu1  ;;  %v990_v15 = vunpack.c.l.bf16 %v1352_v14 }
 0x2fe   : > { %1510 = vpow2.f32 %v1345_v17  ;;  %v1347_v20 = vmul.f32 -1.442695, %v910_v18  ;;  %v911_v21 = vadd.f32 %v860_v19, %v816_v13  ;;  %v1349_v1 = vmul.f32 -1.442695, %v912_v39 }
 0x2ff   : > { %v913_v54 = vadd.f32 %v903_v50, %v818_v0  ;;  %v991_v17 = vunpack.c.h.bf16 %v1352_v14  ;;  %v992_v39 = vunpack.c.l.bf16 %v1353_v24 }
 0x300   : > { %1512 = vpow2.f32 %v1347_v20  ;;  %v1348_v26 = vmul.f32 -1.442695, %v911_v21  ;;  %v994_v20 = vunpack.c.l.bf16 %v1354_v16 }
 0x302   : > { %1514 = vpow2.f32 %v1348_v26 }
 0x303   : > { %1516 = vpow2.f32 %v1346_v36 }
 0x309   : > { %v1509_v41 = vpop.eup %1508 }
 0x30a   : > { %v932_v25 = vadd.f32 1.0, %v1509_v41 }
 0x30b   : > { %v1511_v51 = vpop.eup %1510 }
 0x30c   : > { %1518 = vrcp.f32 %v932_v25  ;;  %v933_v53 = vadd.f32 1.0, %v1511_v51 }
 0x30d   : > { %v1513_v7 = vpop.eup %1512  ;;  %1520 = vtanh.f32 %v909_v44  ;;  %v1355_v44 = vld [vmem:[%s1643_s22 + $0x78] sm:$0xff] }
 0x30e   : > { %1522 = vrcp.f32 %v933_v53  ;;  %v935_v55 = vadd.f32 1.0, %v1513_v7  ;;  %v996_v50 = vunpack.c.l.bf16 %v1355_v44 }
 0x30f   : > { %v1515_v57 = vpop.eup %1514  ;;  %1524 = vpow2.f32 %v1349_v1  ;;  %v993_v1 = vunpack.c.h.bf16 %v1353_v24 }
 0x310   : > { %1526 = vrcp.f32 %v935_v55  ;;  %v936_v58 = vadd.f32 1.0, %v1515_v57  ;;  %v1517_v59 = vpop.eup %1516  ;;  %v997_v57 = vunpack.c.h.bf16 %v1355_v44 }
 0x311   : > { %1528 = vtanh.f32 %v913_v54  ;;  %v934_v63 = vadd.f32 1.0, %v1517_v59 }
 0x312   : > { %1530 = vrcp.f32 %v936_v58 }
 0x313   : > { %1532 = vrcp.f32 %v934_v63 }
 0x319   : > { %v1519_v60 = vpop.eup %1518 }
 0x31a   : > { %v1521_v61 = vpop.eup %1520 }
 0x31b   : > { %v1523_v62 = vpop.eup %1522  ;;  %v954_v38 = vmul.f32 %v1521_v61, %v1519_v60 }
 0x31c   : > { %v1525_v28 = vpop.eup %1524  ;;  %v952_v37 = vmul.f32 %v1523_v62, %v1988_v32 }
 0x31d   : > { %v1527_v27 = vpop.eup %1526  ;;  %v937_v45 = vadd.f32 1.0, %v1525_v28 }
 0x31e   : > { %v1529_v35 = vpop.eup %1528  ;;  %v956_v42 = vadd.f32 %v954_v38, %v952_v37 }
 0x31f   : > { %v1531_v43 = vpop.eup %1530  ;;  %v955_v52 = vmul.f32 %v1529_v35, %v1527_v27 }
 0x320   : > { %1534 = vtanh.f32 %v956_v42  ;;  %v953_v46 = vmul.f32 %v1531_v43, %v1992_v33  ;;  %v2046_v49 = vsel %vm974_vm12, %v956_v42, %v1988_v32  ;;  %v1533_v4 = vpop.eup %1532 }
 0x321   : > { %1536 = vrcp.f32 %v937_v45 }
 0x322   : > { %v957_v2 = vadd.f32 %v955_v52, %v953_v46  ;;  %v1149_v52 = vpop.permute.xlu0 %1148 }
 0x323   : > { %vm1153_vm14 = vcmp.eq.s32.totalorder %v1149_v52, 1 }
 0x324   : > { %1538 = vtanh.f32 %v957_v2  ;;  %v2049_v3 = vsel %vm975_vm13, %v957_v2, %v1992_v33 }
 0x32d   : > { %v1535_v5 = vpop.eup %1534 }
 0x32e   : > { %v960_v6 = vmul.f32 %v1535_v5, %v1533_v4  ;;  %v1537_v8 = vpop.eup %1536 }
 0x330   : > { %v980_v9 = vsel %vm974_vm12, %v960_v6, 0.0  ;;  %v2055_v11 = vsel %vm974_vm12, %v960_v6, %v1998_v47 }
 0x331   : > { %v1539_v10 = vpop.eup %1538  ;;  %1350 = vst [vmem:[%s1648_s25 + $0x20] sm:$0xff] %v980_v9 }
 0x332   : > { %v961_v32 = vmul.f32 %v1539_v10, %v1537_v8  ;;  %v1152_v10 = vpop.permute.xlu1 %1151 }
 0x333   : > { %vm1154_vm15 = vcmp.eq.s32.totalorder %v1152_v10, 1 }
 0x334   : > { %v2058_v12 = vsel %vm975_vm13, %v961_v32, %v2001_v48  ;;  %v981_v33 = vsel %vm975_vm13, %v961_v32, 0.0 }
 0x335   : > { %1351 = vst [vmem:[%s1648_s25 + $0x28] sm:$0xff] %v981_v33  ;;  %v998_v13 = vpack.c.bf16 %v2058_v12, %v2055_v11 }
 0x337   : > { %1032 = vmatmul.mubr.bf16.vlgmr.msra.gmra.mxu0 %v998_v13  ;;  %1075 = vmatmul.mubr.bf16.vlgmr.msra.gmra.mxu1 %v998_v13 }
 0x3f7   : > { %v1033_v18 = vpop.f32.mrf.mxu0  ;;  %v1076_v26 = vpop.f32.mrf.mxu1 }
 0x3f8   : > { %v1085_v19 = vadd.f32 %v1033_v18, %v990_v15  ;;  %v1087_v25 = vadd.f32 %v1076_v26, %v992_v39 }
 0x3f9   : > { %v1035_v47 = vpop.f32.mrf.mxu0  ;;  %v1078_v41 = vpop.f32.mrf.mxu1 }
 0x3fa   : > { %v1356_v21 = vmul.f32 -1.442695, %v1085_v19  ;;  %v1086_v48 = vadd.f32 %v1035_v47, %v991_v17  ;;  %v1358_v53 = vmul.f32 -1.442695, %v1087_v25  ;;  %v1088_v55 = vadd.f32 %v1078_v41, %v993_v1 }
 0x3fb   : > { %v1037_v23 = vpop.f32.mrf.mxu0  ;;  %v1080_v51 = vpop.f32.mrf.mxu1 }
 0x3fc   : > { %1540 = vpow2.f32 %v1356_v21  ;;  %v1357_v29 = vmul.f32 -1.442695, %v1086_v48  ;;  %v1089_v30 = vadd.f32 %v1037_v23, %v994_v20  ;;  %v1091_v7 = vadd.f32 %v1080_v51, %v996_v50 }
 0x3fd   : > { %v1039_v31 = vpop.f32.mrf.mxu0  ;;  %v1082_v59 = vpop.f32.mrf.mxu1 }
 0x3fe   : > { %1542 = vpow2.f32 %v1357_v29  ;;  %v1359_v34 = vmul.f32 -1.442695, %v1089_v30  ;;  %v1090_v36 = vadd.f32 %v1039_v31, %v995_v22  ;;  %v1361_v61 = vmul.f32 -1.442695, %v1091_v7 }
 0x3ff   : > { %v1092_v28 = vadd.f32 %v1082_v59, %v997_v57 }
 0x400   : > { %1544 = vpow2.f32 %v1359_v34  ;;  %v1360_v0 = vmul.f32 -1.442695, %v1090_v36 }
 0x402   : > { %1546 = vpow2.f32 %v1360_v0 }
 0x403   : > { %1548 = vpow2.f32 %v1358_v53 }
 0x409   : > { %v1541_v54 = vpop.eup %1540 }
 0x40a   : > { %v1111_v58 = vadd.f32 1.0, %v1541_v54 }
 0x40b   : > { %v1543_v60 = vpop.eup %1542 }
 0x40c   : > { %1550 = vrcp.f32 %v1111_v58  ;;  %v1112_v62 = vadd.f32 1.0, %v1543_v60 }
 0x40d   : > { %v1545_v63 = vpop.eup %1544  ;;  %1552 = vtanh.f32 %v1088_v55 }
 0x40e   : > { %1554 = vrcp.f32 %v1112_v62  ;;  %v1114_v37 = vadd.f32 1.0, %v1545_v63 }
 0x40f   : > { %v1547_v38 = vpop.eup %1546  ;;  %1556 = vpow2.f32 %v1361_v61 }
 0x410   : > { %1558 = vrcp.f32 %v1114_v37  ;;  %v1115_v27 = vadd.f32 1.0, %v1547_v38  ;;  %v1549_v35 = vpop.eup %1548 }
 0x411   : > { %1560 = vtanh.f32 %v1092_v28  ;;  %v1113_v45 = vadd.f32 1.0, %v1549_v35 }
 0x412   : > { %1562 = vrcp.f32 %v1115_v27 }
 0x413   : > { %1564 = vrcp.f32 %v1113_v45 }
 0x419   : > { %v1551_v40 = vpop.eup %1550 }
 0x41a   : > { %v1553_v42 = vpop.eup %1552 }
 0x41b   : > { %v1555_v43 = vpop.eup %1554  ;;  %v1133_v2 = vmul.f32 %v1553_v42, %v1551_v40 }
 0x41c   : > { %v1557_v46 = vpop.eup %1556  ;;  %v1131_v56 = vmul.f32 %v1555_v43, %v2046_v49 }
 0x41d   : > { %v1559_v4 = vpop.eup %1558  ;;  %v1116_v9 = vadd.f32 1.0, %v1557_v46 }
 0x41e   : > { %v1561_v5 = vpop.eup %1560  ;;  %v1135_v6 = vadd.f32 %v1133_v2, %v1131_v56 }
 0x41f   : > { %v1563_v8 = vpop.eup %1562  ;;  %v1134_v13 = vmul.f32 %v1561_v5, %v1559_v4 }
 0x420   : > { %1566 = vtanh.f32 %v1135_v6  ;;  %v1157_v32 = vsel %vm1153_vm14, %v1135_v6, %v2046_v49  ;;  %v1132_v33 = vmul.f32 %v1563_v8, %v2049_v3  ;;  %v1565_v16 = vpop.eup %1564 }
 0x421   : > { %1166 = vst [vmem:[#allocation3 + $0x8] sm:$0xff] %v1157_v32  ;;  %1568 = vrcp.f32 %v1116_v9 }
 0x422   : > { %v1136_v14 = vadd.f32 %v1134_v13, %v1132_v33 }
 0x424   : > { %1570 = vtanh.f32 %v1136_v14  ;;  %v1158_v15 = vsel %vm1154_vm15, %v1136_v14, %v2049_v3 }
 0x425   : > { %1167 = vst [vmem:[#allocation3] sm:$0xff] %v1158_v15 }
 0x42d   : > { %v1567_v17 = vpop.eup %1566 }
 0x42e   : > { %v1139_v18 = vmul.f32 %v1567_v17, %v1565_v16  ;;  %v1569_v19 = vpop.eup %1568 }
 0x430   : > { %v1155_v49 = vsel %vm1153_vm14, %v1139_v18, %v2055_v11  ;;  %v1159_v20 = vsel %vm1153_vm14, %v1139_v18, 0.0 }
 0x431   : > { %v1571_v47 = vpop.eup %1570  ;;  %1362 = vst [vmem:[%s1648_s25 + $0x30] sm:$0xff] %v1159_v20  ;;  %1164 = vst [vmem:[#allocation2] sm:$0xff] %v1155_v49 }
 0x432   : > { %v1140_v21 = vmul.f32 %v1571_v47, %v1569_v19 }
 0x434   : > { %v1156_v48 = vsel %vm1154_vm15, %v1140_v21, %v2058_v12  ;;  %v1160_v22 = vsel %vm1154_vm15, %v1140_v21, 0.0 }
 0x435   : > { %1363 = vst [vmem:[%s1648_s25 + $0x38] sm:$0xff] %v1160_v22  ;;  %1165 = vst [vmem:[#allocation2 + $0x8] sm:$0xff] %v1156_v48 }
 0x436 PF: > { %s13_s14 = sadd.s32 1, %s1594_s14   ;;  %s2094_s12 = smov %s1590_s13 }
 0x437   : > { %p10_p6 = scmp.ge.s32.totalorder %s13_s14, 4   ;;  %s2095_s13 = smov %s2097_s15 }
 0x439   :  { %12 = sbr.rel (!%p10_p6) target bundleno = 2 (0x2), region = 75 }

</bundles_post_ra>
